<compile_context>
chip_gen: v7x
topology: tpu7x:2x2x1
jax: 0.10.0
libtpu: 0.0.40
codegen_flags: <defaults>
</compile_context>

<pallas_src>
import functools

import jax
import jax.numpy as jnp
from jax.experimental import pallas as pl
from jax.experimental.pallas import tpu as pltpu


STEM_CH = 24        # efficientnet_v2_m stem output channels
STEM_CH_PAD = 32    # padded for bf16 sublane packing
HEAD_CH = 1280      # efficientnet_v2_m classifier in_features
K1 = 3 * 3 * 3      # im2col depth of the 3x3x3 stem conv
K1_PAD = 32


def _round_up(x, m):
    return ((x + m - 1) // m) * m


def _cdiv(a, b):
    return (a + b - 1) // b


def _device_config():
    """(tm_target, vmem_limit_bytes, use_bf16_eup) per TPU generation."""
    kind = ""
    try:
        kind = jax.devices()[0].device_kind.lower()
    except Exception:
        pass
    if "v6" in kind or "trillium" in kind:
        return 2048, 80 * 1024 * 1024, True    # 128 MiB VMEM, bf16 EUP
    if "v7" in kind or "7x" in kind:
        return 1024, 48 * 1024 * 1024, True    # 64 MiB/TC VMEM, bf16 EUP
    if "v5e" in kind or "v5 lite" in kind or "v5litepod" in kind:
        return 2048, 80 * 1024 * 1024, False   # 128 MiB VMEM, no bf16 EUP/VPU
    return 1024, 48 * 1024 * 1024, False       # conservative default


def _silu(x, use_bf16_eup):
    """SiLU via tanh: x*sigmoid(x) = 0.5*x*(1+tanh(0.5*x)) — one EUP op.

    On v6e/v7x the tanh runs in bf16 (native bf16 EUP); the surrounding
    muls/adds stay f32 so the pool accumulator keeps f32 precision.
    """
    half = 0.5 * x
    if use_bf16_eup:
        t = jnp.tanh(half.astype(jnp.bfloat16)).astype(jnp.float32)
    else:
        t = jnp.tanh(half)
    return half * (1.0 + t)


# ----------------------------------------------------------------------------
# Fused Pallas kernel: stem conv + head conv + global-avg-pool + classifier
# ----------------------------------------------------------------------------

def _fused_kernel(x_ref, ws_ref, bs_ref, wh_ref, bh_ref, wc_ref, bc_ref,
                  logits_ref, acc_ref, *, pad_rows, inv_hw, use_bf16_eup):
    """Grid = (batch, m_tiles).  acc_ref is an (8, 1280) f32 VMEM scratch
    holding 8 sublane partial sums of the head activation; the logits output
    block (per batch) is written only at the last m step."""
    m = pl.program_id(1)
    last_m = pl.num_programs(1) - 1

    @pl.when(m == 0)
    def _init():
        acc_ref[...] = jnp.zeros_like(acc_ref)

    # stem 3x3 conv as im2col GEMM (BN scale pre-folded into bf16 weights)
    s = jnp.dot(x_ref[...], ws_ref[...], preferred_element_type=jnp.float32)
    s = _silu(s + bs_ref[...], use_bf16_eup)

    # head 1x1 conv (BN folded) — activation never leaves VMEM/vregs
    h = jnp.dot(s.astype(wh_ref.dtype), wh_ref[...],
                preferred_element_type=jnp.float32)
    h = _silu(h + bh_ref[...], use_bf16_eup)

    # pool partial sums: 8 independent sublane partials (pure VPU vreg adds,
    # no XLU reduce per tile).  Padded rows are NOT masked here; their
    # constant contribution is subtracted in closed form at finalize.
    tm, c2 = h.shape
    acc_ref[...] += h.reshape(tm // 8, 8, c2).sum(axis=0)

    @pl.when(m == last_m)
    def _finalize():
        total = jnp.sum(acc_ref[...], axis=0, keepdims=True)        # (1, 1280)
        if pad_rows:
            # zero patch rows produce a constant head activation; cancel it.
            s0 = _silu(bs_ref[...], use_bf16_eup)                    # (1, c1)
            h0 = jnp.dot(s0.astype(wh_ref.dtype), wh_ref[...],
                         preferred_element_type=jnp.float32)
            h0 = _silu(h0 + bh_ref[...], use_bf16_eup)
            total = total - float(pad_rows) * h0
        pooled = total * inv_hw                                      # (1, 1280)

        # classifier Linear (Dropout is identity in eval), bf16 MXU + f32 acc,
        # lane-dense 128-column padded output (sliced back in the wrapper).
        logits = jnp.dot(pooled.astype(wc_ref.dtype), wc_ref[...],
                         preferred_element_type=jnp.float32) + bc_ref[...]
        logits_ref[...] = jnp.broadcast_to(logits, logits_ref.shape)


def fused_forward(patches, w_stem, b_stem, w_head, b_head, w_cls, b_cls,
                  *, hw, tm, vmem_limit, use_bf16_eup):
    """patches: [N, HWp, K1p] bf16 -> logits [N, cls_pad] f32."""
    N, hwp, k1p = patches.shape
    c1 = w_stem.shape[1]
    c2 = w_head.shape[1]
    cp = w_cls.shape[1]
    n_m = hwp // tm

    kernel = functools.partial(_fused_kernel,
                               pad_rows=hwp - hw, inv_hw=1.0 / hw,
                               use_bf16_eup=use_bf16_eup)

    out = pl.pallas_call(
        kernel,
        # 8-sublane lane-dense output slab per batch; row 0 holds the logits.
        out_shape=jax.ShapeDtypeStruct((N, 8, cp), jnp.float32),
        grid_spec=pltpu.PrefetchScalarGridSpec(
            num_scalar_prefetch=0,
            grid=(N, n_m),
            in_specs=[
                pl.BlockSpec((None, tm, k1p), lambda b, m: (b, m, 0)),
                pl.BlockSpec((k1p, c1), lambda b, m: (0, 0)),
                pl.BlockSpec((1, c1), lambda b, m: (0, 0)),
                pl.BlockSpec((c1, c2), lambda b, m: (0, 0)),
                pl.BlockSpec((1, c2), lambda b, m: (0, 0)),
                pl.BlockSpec((c2, cp), lambda b, m: (0, 0)),
                pl.BlockSpec((1, cp), lambda b, m: (0, 0)),
            ],
            out_specs=pl.BlockSpec((None, 8, cp), lambda b, m: (b, 0, 0)),
            scratch_shapes=[pltpu.VMEM((8, c2), jnp.float32)],
        ),
        compiler_params=pltpu.CompilerParams(
            dimension_semantics=("parallel", "arbitrary"),
            vmem_limit_bytes=vmem_limit,
        ),
    )(patches, w_stem, b_stem, w_head, b_head, w_cls, b_cls)
    return out[:, 0, :]


# ----------------------------------------------------------------------------
# Glue: im2col (plain JAX data movement); all padding folded into ONE jnp.pad
# ----------------------------------------------------------------------------

def im2col_padded(x_nhwc, kh, kw, stride, pad, hwp, k1p):
    N, H, W, C = x_nhwc.shape
    xp = jnp.pad(x_nhwc, ((0, 0), (pad, pad), (pad, pad), (0, 0)))
    Ho = (H + 2 * pad - kh) // stride + 1
    Wo = (W + 2 * pad - kw) // stride + 1
    cols = []
    for i in range(kh):
        for j in range(kw):
            cols.append(
                xp[:, i:i + Ho * stride:stride, j:j + Wo * stride:stride, :])
    patches = jnp.concatenate(cols, axis=-1).reshape(N, Ho * Wo, kh * kw * C)
    # single padding pass: spatial rows to hwp, im2col depth to k1p
    return jnp.pad(patches,
                   ((0, 0), (0, hwp - Ho * Wo), (0, k1p - kh * kw * C)))


def _stem_out_hw(H, W):
    Ho = (H + 2 * 1 - 3) // 2 + 1
    Wo = (W + 2 * 1 - 3) // 2 + 1
    return Ho, Wo


# ----------------------------------------------------------------------------
# Model
# ----------------------------------------------------------------------------

def init_params(key, classes_count, in_ch=3):
    ks = jax.random.split(key, 8)
    eps = 1e-3

    def bn_fold(key_g, key_b, c):
        gamma = 1.0 + 0.01 * jax.random.normal(key_g, (1, c), jnp.float32)
        beta = 0.01 * jax.random.normal(key_b, (1, c), jnp.float32)
        run_mean = jnp.zeros((1, c), jnp.float32)
        run_var = jnp.ones((1, c), jnp.float32)
        scale = gamma / jnp.sqrt(run_var + eps)
        bias = beta - run_mean * scale
        return scale, bias

    # stem conv weight laid out [kh*kw*Cin, Cout]; BN scale folded in
    w_stem = 0.1 * jax.random.normal(ks[0], (K1, STEM_CH), jnp.float32)
    s_stem, b_stem = bn_fold(ks[1], ks[2], STEM_CH)
    w_stem = w_stem * s_stem

    # head 1x1 conv weight [Cin, Cout]; BN folded
    w_head = 0.05 * jax.random.normal(ks[3], (STEM_CH, HEAD_CH), jnp.float32)
    s_head, b_head = bn_fold(ks[4], ks[5], HEAD_CH)
    w_head = w_head * s_head

    # classifier Linear(1280, classes_count), padded to lane-dense 128 cols
    w_cls = 0.02 * jax.random.normal(ks[6], (HEAD_CH, classes_count), jnp.float32)
    b_cls = 0.01 * jax.random.normal(ks[7], (1, classes_count), jnp.float32)
    cls_pad = _round_up(max(classes_count, 1), 128)

    # zero-pad stem channels 24->32 and im2col depth 27->32 (bf16 packing);
    # pad columns get zero bias (SiLU(0)=0) and zero head rows -> exact no-op.
    w_stem_p = jnp.zeros((K1_PAD, STEM_CH_PAD), jnp.float32)
    w_stem_p = w_stem_p.at[:K1, :STEM_CH].set(w_stem)
    b_stem_p = jnp.zeros((1, STEM_CH_PAD), jnp.float32).at[:, :STEM_CH].set(b_stem)
    w_head_p = jnp.zeros((STEM_CH_PAD, HEAD_CH), jnp.float32)
    w_head_p = w_head_p.at[:STEM_CH, :].set(w_head)
    w_cls_p = jnp.zeros((HEAD_CH, cls_pad), jnp.float32).at[:, :classes_count].set(w_cls)
    b_cls_p = jnp.zeros((1, cls_pad), jnp.float32).at[:, :classes_count].set(b_cls)

    return dict(
        w_stem=w_stem_p.astype(jnp.bfloat16), b_stem=b_stem_p,
        w_head=w_head_p.astype(jnp.bfloat16), b_head=b_head,
        w_cls=w_cls_p.astype(jnp.bfloat16), b_cls=b_cls_p,
    )


@functools.partial(jax.jit, static_argnames=("classes_count",))
def bryophyta_forward(params, x_nchw, *, classes_count):
    tm_target, vmem_limit, use_bf16_eup = _device_config()

    N, C, H, W = x_nchw.shape
    Ho, Wo = _stem_out_hw(H, W)
    hw = Ho * Wo

    # tile size chosen to minimise last-tile padding (awkward hw sizes)
    n_tiles = max(1, _cdiv(hw, tm_target))
    tm = _round_up(_cdiv(hw, n_tiles), 8)
    n_m = _cdiv(hw, tm)
    hwp = n_m * tm

    # NCHW (PyTorch convention) -> NHWC, bf16 activation path (f32 accumulation
    # happens inside the kernel via preferred_element_type).
    # TODO(synk): for real EfficientNet resolutions, gather the 3x3 taps inside
    # the kernel via pl.ds strided slices instead of materializing im2col in HBM.
    x = jnp.transpose(x_nchw, (0, 2, 3, 1)).astype(jnp.bfloat16)
    patches = im2col_padded(x, kh=3, kw=3, stride=2, pad=1, hwp=hwp, k1p=K1_PAD)

    # TODO(synk): FusedMBConv/MBConv backbone blocks of efficientnet_v2_m omitted.
    logits = fused_forward(
        patches, params["w_stem"], params["b_stem"],
        params["w_head"], params["b_head"],
        params["w_cls"], params["b_cls"],
        hw=hw, tm=tm, vmem_limit=vmem_limit, use_bf16_eup=use_bf16_eup)
    return logits[:, :classes_count]


# ----------------------------------------------------------------------------
# Pure-JAX reference (same dtypes / folded BN) for a tolerance check
# ----------------------------------------------------------------------------

def reference_forward(params, x_nchw, classes_count):
    N, C, H, W = x_nchw.shape
    Ho, Wo = _stem_out_hw(H, W)
    hw = Ho * Wo
    x = jnp.transpose(x_nchw, (0, 2, 3, 1)).astype(jnp.bfloat16)
    patches = im2col_padded(x, 3, 3, 2, 1, hwp=hw, k1p=K1_PAD).astype(jnp.float32)
    s = jax.nn.silu(patches @ params["w_stem"].astype(jnp.float32) + params["b_stem"])
    h = jax.nn.silu(s.astype(jnp.bfloat16).astype(jnp.float32)
                    @ params["w_head"].astype(jnp.float32) + params["b_head"])
    pooled = h.mean(axis=1)
    logits = (pooled.astype(jnp.bfloat16).astype(jnp.float32)
              @ params["w_cls"].astype(jnp.float32) + params["b_cls"])
    return logits[:, :classes_count]


if __name__ == "__main__":
    classes_count = 10
    key = jax.random.PRNGKey(0)
    k_params, k_x = jax.random.split(key)

    params = init_params(k_params, classes_count)

    # Small NCHW input consistent with the module (3-channel image input).
    x = jax.random.normal(k_x, (2, 3, 16, 16), jnp.float32)

    logits = bryophyta_forward(params, x, classes_count=classes_count)
    jax.block_until_ready(logits)

    assert logits.shape == (2, classes_count), logits.shape
    assert logits.dtype == jnp.float32
    assert bool(jnp.all(jnp.isfinite(logits)))

    ref = reference_forward(params, x, classes_count)
    assert bool(jnp.allclose(logits, ref, atol=5e-2, rtol=5e-2)), (
        float(jnp.max(jnp.abs(logits - ref))))

    print("KERNEL_OK")
</pallas_src>

<mosaic_0001>
module attributes {stable_mosaic.version = 11 : i64} {
  func.func @_fused_kernel(%arg0: i32, %arg1: i32, %arg2: memref<1x64x32xbf16, #tpu.memory_space<vmem>>, %arg3: memref<32x32xbf16, #tpu.memory_space<vmem>>, %arg4: memref<1x32xf32, #tpu.memory_space<vmem>>, %arg5: memref<32x1280xbf16, #tpu.memory_space<vmem>>, %arg6: memref<1x1280xf32, #tpu.memory_space<vmem>>, %arg7: memref<1280x128xbf16, #tpu.memory_space<vmem>>, %arg8: memref<1x128xf32, #tpu.memory_space<vmem>>, %arg9: memref<1x8x128xf32, #tpu.memory_space<vmem>>, %arg10: memref<8x1280xf32, #tpu.memory_space<vmem>>) attributes {dimension_semantics = [#tpu.dimension_semantics<parallel>, #tpu.dimension_semantics<arbitrary>], iteration_bounds = array<i64: 2, 1>, scalar_prefetch = 0 : i64, scratch_operands = 1 : i64, tpu.core_type = #tpu.core_type<tc>, window_params = [{transform_indices = @transform_0, window_bounds = array<i64: 1, 64, 32>}, {pipeline_mode = #tpu.pipeline_mode<synchronous>, transform_indices = @transform_1, window_bounds = array<i64: 32, 32>}, {pipeline_mode = #tpu.pipeline_mode<synchronous>, transform_indices = @transform_2, window_bounds = array<i64: 1, 32>}, {pipeline_mode = #tpu.pipeline_mode<synchronous>, transform_indices = @transform_3, window_bounds = array<i64: 32, 1280>}, {pipeline_mode = #tpu.pipeline_mode<synchronous>, transform_indices = @transform_4, window_bounds = array<i64: 1, 1280>}, {pipeline_mode = #tpu.pipeline_mode<synchronous>, transform_indices = @transform_5, window_bounds = array<i64: 1280, 128>}, {pipeline_mode = #tpu.pipeline_mode<synchronous>, transform_indices = @transform_6, window_bounds = array<i64: 1, 128>}, {transform_indices = @transform_7, window_bounds = array<i64: 1, 8, 128>}]} {
    %c0_i32 = arith.constant 0 : i32
    %0 = arith.cmpi eq, %arg1, %c0_i32 : i32
    %1 = arith.extui %0 : i1 to i32
    %c0_i32_0 = arith.constant 0 : i32
    %2 = arith.cmpi ne, %1, %c0_i32_0 : i32
    scf.if %2 {
      %cst_23 = arith.constant 0.000000e+00 : f32
      %36 = vector.broadcast %cst_23 : f32 to vector<8x1280xf32>
      %c0_24 = arith.constant 0 : index
      %c0_25 = arith.constant 0 : index
      %37 = vector.load %arg10[%c0_24, %c0_25] : memref<8x1280xf32, #tpu.memory_space<vmem>>, vector<8x1280xf32>
      tpu.vector_store %arg10[%c0_24, %c0_25], %36 {strides = array<i32>} : memref<8x1280xf32, #tpu.memory_space<vmem>>, vector<8x1280xf32>,
    } else {
    }
    %c0 = arith.constant 0 : index
    %c0_1 = arith.constant 0 : index
    %c0_2 = arith.constant 0 : index
    %3 = vector.load %arg2[%c0, %c0_1, %c0_2] : memref<1x64x32xbf16, #tpu.memory_space<vmem>>, vector<1x64x32xbf16>
    %4 = vector.shape_cast %3 : vector<1x64x32xbf16> to vector<64x32xbf16>
    %c0_3 = arith.constant 0 : index
    %c0_4 = arith.constant 0 : index
    %5 = vector.load %arg3[%c0_3, %c0_4] : memref<32x32xbf16, #tpu.memory_space<vmem>>, vector<32x32xbf16>
    %cst = arith.constant dense<0.000000e+00> : vector<64x32xf32>
    %6 = tpu.matmul %4, %5, %cst {dimension_numbers = #tpu.dot_dimension_numbers<[1], [0], [0], [1], [0, 0, 1, 1], [], []>} : vector<64x32xbf16>, vector<32x32xbf16>, vector<64x32xf32> -> vector<64x32xf32>
    %c0_5 = arith.constant 0 : index
    %c0_6 = arith.constant 0 : index
    %7 = vector.load %arg4[%c0_5, %c0_6] : memref<1x32xf32, #tpu.memory_space<vmem>>, vector<1x32xf32>
    %8 = vector.broadcast %7 : vector<1x32xf32> to vector<64x32xf32>
    %9 = arith.addf %6, %8 : vector<64x32xf32>
    %cst_7 = arith.constant 5.000000e-01 : f32
    %10 = vector.broadcast %cst_7 : f32 to vector<64x32xf32>
    %11 = arith.mulf %10, %9 : vector<64x32xf32>
    %12 = math.tanh %11 : vector<64x32xf32>
    %cst_8 = arith.constant 1.000000e+00 : f32
    %13 = vector.broadcast %cst_8 : f32 to vector<64x32xf32>
    %14 = arith.addf %13, %12 : vector<64x32xf32>
    %15 = arith.mulf %11, %14 : vector<64x32xf32>
    %16 = arith.truncf %15 : vector<64x32xf32> to vector<64x32xbf16>
    %c0_9 = arith.constant 0 : index
    %c0_10 = arith.constant 0 : index
    %17 = vector.load %arg5[%c0_9, %c0_10] : memref<32x1280xbf16, #tpu.memory_space<vmem>>, vector<32x1280xbf16>
    %cst_11 = arith.constant dense<0.000000e+00> : vector<64x1280xf32>
    %18 = tpu.matmul %16, %17, %cst_11 {dimension_numbers = #tpu.dot_dimension_numbers<[1], [0], [0], [1], [0, 0, 1, 1], [], []>} : vector<64x32xbf16>, vector<32x1280xbf16>, vector<64x1280xf32> -> vector<64x1280xf32>
    %c0_12 = arith.constant 0 : index
    %c0_13 = arith.constant 0 : index
    %19 = vector.load %arg6[%c0_12, %c0_13] : memref<1x1280xf32, #tpu.memory_space<vmem>>, vector<1x1280xf32>
    %20 = vector.broadcast %19 : vector<1x1280xf32> to vector<64x1280xf32>
    %21 = arith.addf %18, %20 : vector<64x1280xf32>
    %cst_14 = arith.constant 5.000000e-01 : f32
    %22 = vector.broadcast %cst_14 : f32 to vector<64x1280xf32>
    %23 = arith.mulf %22, %21 : vector<64x1280xf32>
    %24 = math.tanh %23 : vector<64x1280xf32>
    %cst_15 = arith.constant 1.000000e+00 : f32
    %25 = vector.broadcast %cst_15 : f32 to vector<64x1280xf32>
    %26 = arith.addf %25, %24 : vector<64x1280xf32>
    %27 = arith.mulf %23, %26 : vector<64x1280xf32>
    %c0_16 = arith.constant 0 : index
    %c0_17 = arith.constant 0 : index
    %28 = vector.load %arg10[%c0_16, %c0_17] : memref<8x1280xf32, #tpu.memory_space<vmem>>, vector<8x1280xf32>
    %29 = vector.shape_cast %27 : vector<64x1280xf32> to vector<8x8x1280xf32>
    %cst_18 = arith.constant dense<0.000000e+00> : vector<8x1280xf32>
    %30 = vector.multi_reduction <add>, %29, %cst_18 [0] : vector<8x8x1280xf32> to vector<8x1280xf32>
    %31 = arith.addf %28, %30 : vector<8x1280xf32>
    %c0_19 = arith.constant 0 : index
    %c0_20 = arith.constant 0 : index
    %32 = vector.load %arg10[%c0_19, %c0_20] : memref<8x1280xf32, #tpu.memory_space<vmem>>, vector<8x1280xf32>
    tpu.vector_store %arg10[%c0_19, %c0_20], %31 {strides = array<i32>} : memref<8x1280xf32, #tpu.memory_space<vmem>>, vector<8x1280xf32>,
    %c0_i32_21 = arith.constant 0 : i32
    %33 = arith.cmpi eq, %arg1, %c0_i32_21 : i32
    %34 = arith.extui %33 : i1 to i32
    %c0_i32_22 = arith.constant 0 : i32
    %35 = arith.cmpi ne, %34, %c0_i32_22 : i32
    scf.if %35 {
      %c0_23 = arith.constant 0 : index
      %c0_24 = arith.constant 0 : index
      %36 = vector.load %arg10[%c0_23, %c0_24] : memref<8x1280xf32, #tpu.memory_space<vmem>>, vector<8x1280xf32>
      %cst_25 = arith.constant dense<0.000000e+00> : vector<1280xf32>
      %37 = vector.multi_reduction <add>, %36, %cst_25 [0] : vector<8x1280xf32> to vector<1280xf32>
      %38 = vector.shape_cast %37 : vector<1280xf32> to vector<1x1280xf32>
      %cst_26 = arith.constant 1.562500e-02 : f32
      %39 = vector.broadcast %cst_26 : f32 to vector<1x1280xf32>
      %40 = arith.mulf %38, %39 : vector<1x1280xf32>
      %41 = arith.truncf %40 : vector<1x1280xf32> to vector<1x1280xbf16>
      %c0_27 = arith.constant 0 : index
      %c0_28 = arith.constant 0 : index
      %42 = vector.load %arg7[%c0_27, %c0_28] : memref<1280x128xbf16, #tpu.memory_space<vmem>>, vector<1280x128xbf16>
      %cst_29 = arith.constant dense<0.000000e+00> : vector<1x128xf32>
      %43 = tpu.matmul %41, %42, %cst_29 {dimension_numbers = #tpu.dot_dimension_numbers<[1], [0], [0], [1], [0, 0, 1, 1], [], []>} : vector<1x1280xbf16>, vector<1280x128xbf16>, vector<1x128xf32> -> vector<1x128xf32>
      %c0_30 = arith.constant 0 : index
      %c0_31 = arith.constant 0 : index
      %44 = vector.load %arg8[%c0_30, %c0_31] : memref<1x128xf32, #tpu.memory_space<vmem>>, vector<1x128xf32>
      %45 = arith.addf %43, %44 : vector<1x128xf32>
      %46 = vector.shape_cast %45 : vector<1x128xf32> to vector<1x128xf32>
      %47 = vector.broadcast %46 : vector<1x128xf32> to vector<8x128xf32>
      %c0_32 = arith.constant 0 : index
      %c0_33 = arith.constant 0 : index
      %c0_34 = arith.constant 0 : index
      %48 = vector.load %arg9[%c0_32, %c0_33, %c0_34] : memref<1x8x128xf32, #tpu.memory_space<vmem>>, vector<1x8x128xf32>
      %49 = vector.shape_cast %48 : vector<1x8x128xf32> to vector<8x128xf32>
      %50 = vector.shape_cast %47 : vector<8x128xf32> to vector<1x8x128xf32>
      tpu.vector_store %arg9[%c0_32, %c0_33, %c0_34], %50 {strides = array<i32>} : memref<1x8x128xf32, #tpu.memory_space<vmem>>, vector<1x8x128xf32>,
    } else {
    }
    return
  }
  func.func @transform_0(%arg0: i32, %arg1: i32) -> (i32, i32, i32) {
    %c0_i32 = arith.constant 0 : i32
    %c0_i32_0 = arith.constant 0 : i32
    return %arg0, %arg1, %c0_i32 : i32, i32, i32
  }
  func.func @transform_1(%arg0: i32, %arg1: i32) -> (i32, i32) {
    %c0_i32 = arith.constant 0 : i32
    %c0_i32_0 = arith.constant 0 : i32
    %c0_i32_1 = arith.constant 0 : i32
    return %c0_i32, %c0_i32_0 : i32, i32
  }
  func.func @transform_2(%arg0: i32, %arg1: i32) -> (i32, i32) {
    %c0_i32 = arith.constant 0 : i32
    %c0_i32_0 = arith.constant 0 : i32
    %c0_i32_1 = arith.constant 0 : i32
    return %c0_i32, %c0_i32_0 : i32, i32
  }
  func.func @transform_3(%arg0: i32, %arg1: i32) -> (i32, i32) {
    %c0_i32 = arith.constant 0 : i32
    %c0_i32_0 = arith.constant 0 : i32
    %c0_i32_1 = arith.constant 0 : i32
    return %c0_i32, %c0_i32_0 : i32, i32
  }
  func.func @transform_4(%arg0: i32, %arg1: i32) -> (i32, i32) {
    %c0_i32 = arith.constant 0 : i32
    %c0_i32_0 = arith.constant 0 : i32
    %c0_i32_1 = arith.constant 0 : i32
    return %c0_i32, %c0_i32_0 : i32, i32
  }
  func.func @transform_5(%arg0: i32, %arg1: i32) -> (i32, i32) {
    %c0_i32 = arith.constant 0 : i32
    %c0_i32_0 = arith.constant 0 : i32
    %c0_i32_1 = arith.constant 0 : i32
    return %c0_i32, %c0_i32_0 : i32, i32
  }
  func.func @transform_6(%arg0: i32, %arg1: i32) -> (i32, i32) {
    %c0_i32 = arith.constant 0 : i32
    %c0_i32_0 = arith.constant 0 : i32
    %c0_i32_1 = arith.constant 0 : i32
    return %c0_i32, %c0_i32_0 : i32, i32
  }
  func.func @transform_7(%arg0: i32, %arg1: i32) -> (i32, i32, i32) {
    %c0_i32 = arith.constant 0 : i32
    %c0_i32_0 = arith.constant 0 : i32
    %c0_i32_1 = arith.constant 0 : i32
    return %arg0, %c0_i32, %c0_i32_0 : i32, i32, i32
  }
}

</mosaic_0001>

<bundles_post_ra>
// kernel: bryophyta_forward.1
= control target key start
LH: loop header
LB: loop body
LE: loop exit
PB: predicated region body
PF: predicated region fallthrough
CT: control target
= control target key end

     0   :  { %s3118_s24 = smov 0   ;;  %s3120_s25 = smov 0   ;;  %s4178_s0 = inlined_call_operand.vmem [shape: bf16[2,64,32], index: 0, kind: input, shape index: {}]   ;;  %s4179_s1 = inlined_call_operand.vmem [shape: bf16[32,32], index: 1, kind: input, shape index: {}]   ;;  %s4180_s2 = inlined_call_operand.vmem [shape: f32[1,32], index: 2, kind: input, shape index: {}]   ;;  %s4181_s3 = inlined_call_operand.vmem [shape: bf16[32,1280], index: 3, kind: input, shape index: {}]   ;;  %s4182_s4 = inlined_call_operand.vmem [shape: f32[1,1280], index: 4, kind: input, shape index: {}]   ;;  %s4183_s5 = inlined_call_operand.vmem [shape: bf16[1280,128], index: 5, kind: input, shape index: {}]   ;;  %s4184_s6 = inlined_call_operand.vmem [shape: f32[1,128], index: 6, kind: input, shape index: {}]   ;;  %s4185_s7 = inlined_call_operand.vmem [shape: f32[2,8,128], index: 7, kind: output, shape index: {}]  }
   0x1   :  { %s3122_s26 = smov 0  }
   0x2 LB: > { %s29_s27 = sadd.s32 1, %s3071_s25  ;;  %p2466_p0 = scmp.ge.s32.totalorder %s3075_s26, 1  ;;  %s3075_s26 = sphi %s3122_s26, %s17_s26   ;;  %s3071_s25 = sphi %s3120_s25, %s4195_s25   ;;  %s3067_s24 = sphi %s3118_s24, %s4194_s24  }
   0x3   : > { %p31_p1 = scmp.ge.s32.totalorder %s29_s27, 2  ;;  %p256_p2 = scmp.lt.s32.totalorder %s3075_s26, 3 }
   0x5   : > { %s4197_s27 = smov (%p31_p1, %s29_s27), 0  ;;  %p257_p3 = pnand %p2466_p0, %p256_p2 }
   0x7   : > { %260 = sbr.rel (%p257_p3) target bundleno = 872 (0x368), region = 48 }
   0xe   : > { %v2761_v0 = vld [vmem:[%s4179_s1] sm:$0xff]   ;;  %p292_p4 = scmp.lt.s32.totalorder %s3067_s24, 1  ;;  %v2762_v1 = vld [vmem:[%s4179_s1 + $0x8] sm:$0xff]   ;;  %vm371_vm0 = vcmask 261120   ;;  %v2775_v10 = vld [vmem:[%s4181_s3 + $0x54] ss:$40 sps:$4 sm:$0xff]  }
   0xf   : > { %2720 = vmatprep.subr.bf16.mxu0 %v2761_v0  ;;  %2732 = vmatprep.subr.bf16.mxu1 %v2761_v0  ;;  %v2769_v6 = vld [vmem:[%s4181_s3 + $0x4] ss:$40 sps:$4 sm:$0xff]   ;;  %v2767_v8 = vld [vmem:[%s4181_s3] ss:$40 sps:$4 sm:$0xff]   ;;  %v2773_v12 = vld [vmem:[%s4181_s3 + $0x50] ss:$40 sps:$4 sm:$0xff]  }
  0x10   : > { %s4199_s24 = smov (!%p292_p4, %s3067_s24), 1  ;;  %2721 = vmatpush3.bf16.msra.mxu0 %v2761_v0  ;;  %2734 = vmatpush3.bf16.msra.mxu1 %v2761_v0  ;;  %v2772_v7 = vld [vmem:[%s4181_s3 + $0xc] ss:$40 sps:$4 sm:$0xff]   ;;  %v2770_v9 = vld [vmem:[%s4181_s3 + $0x8] ss:$40 sps:$4 sm:$0xff]   ;;  %v3077_v15 = vmov 0  }
  0x11   : > { %2722 = vmatprep.subr.bf16.mxu0 %v2762_v1  ;;  %2733 = vmatprep.subr.bf16.mxu1 %v2762_v1  ;;  %s2603_s9 = sshll.u32 %s4199_s24, 5  ;;  %v2778_v11 = vld [vmem:[%s4181_s3 + $0x5c] ss:$40 sps:$4 sm:$0xff]   ;;  %v2776_v13 = vld [vmem:[%s4181_s3 + $0x58] ss:$40 sps:$4 sm:$0xff]  }
  0x12   : > { %s299_s12 = scalar_lea.vmem %s4178_s0, %s2603_s9  ;;  %v2781_v14 = vld [vmem:[%s4181_s3 + $0x14] ss:$40 sps:$4 sm:$0xff]   ;;  %v2470_v17 = vld [vmem:[%s4180_s2] ss:$0 sm:$0xff] }
  0x13   : > { %v2763_v2 = vld [vmem:[%s299_s12] sm:$0xff]   ;;  %v2764_v3 = vld [vmem:[%s299_s12 + $0x10] sm:$0xff]   ;;  %v2765_v4 = vld [vmem:[%s299_s12 + $0x8] sm:$0xff]  }
  0x14   : > { %2723 = vmatpush3.bf16.msra.mxu0 %v2762_v1  ;;  %2735 = vmatpush3.bf16.msra.mxu1 %v2762_v1  ;;  %v2766_v5 = vld [vmem:[%s299_s12 + $0x18] sm:$0xff]   ;;  %s2469_s12 = sshll.u32 %s4199_s24, 3 }
  0x15   : > { %2724 = vmatprep.mubr.msk.bf16.mxu0 %vm371_vm0, %v2763_v2  ;;  %2728 = vmatprep.mubr.msk.bf16.mxu1 %vm371_vm0, %v2764_v3  ;;  %v2787_v16 = vld [vmem:[%s4181_s3 + $0x1c] ss:$40 sps:$4 sm:$0xff]   ;;  %s304_s15 = scalar_lea.vmem %s4185_s7, %s2469_s12 }
  0x16   : > { %671 = vmatprep.subr.bf16.mxu1 %v2769_v6  ;;  %744 = vmatprep.subr.bf16.mxu0 %v2772_v7  ;;  %v2784_v6 = vld [vmem:[%s4181_s3 + $0x64] ss:$40 sps:$4 sm:$0xff]  }
  0x17   : > { %2725 = vmatmul.mubr.msk.bf16.vlgmr.msra.gmra.mrb[0].mxu0 %vm371_vm0, %v2765_v4  ;;  %2729 = vmatmul.mubr.msk.bf16.vlgmr.msra.gmra.mrb[0].mxu1 %vm371_vm0, %v2766_v5  ;;  %v2779_v4 = vld [vmem:[%s4181_s3 + $0x10] ss:$40 sps:$4 sm:$0xff]  }
  0x18   : > { %672 = vmatpush1.bf16.msra.mxu1 %v2767_v8  ;;  %745 = vmatpush1.bf16.msra.mxu0 %v2770_v9  ;;  %v2785_v8 = vld [vmem:[%s4181_s3 + $0x18] ss:$40 sps:$4 sm:$0xff]   ;;  %v2790_v9 = vld [vmem:[%s4181_s3 + $0x6c] ss:$40 sps:$4 sm:$0xff]  }
  0x19   : > { %673 = vmatprep.subr.bf16.mxu1 %v2775_v10  ;;  %746 = vmatprep.subr.bf16.mxu0 %v2778_v11  ;;  %v2782_v10 = vld [vmem:[%s4181_s3 + $0x60] ss:$40 sps:$4 sm:$0xff]   ;;  %v2793_v11 = vld [vmem:[%s4181_s3 + $0x24] ss:$40 sps:$4 sm:$0xff]  }
  0x1a   : > { %703 = vmatprep.mubr.bf16.mxu1 %v3077_v15  ;;  %776 = vmatprep.mubr.bf16.mxu0 %v3077_v15 }
  0x1c   : > { %674 = vmatpush1.bf16.msra.mxu1 %v2773_v12  ;;  %747 = vmatpush1.bf16.msra.mxu0 %v2776_v13  ;;  %v2788_v12 = vld [vmem:[%s4181_s3 + $0x68] ss:$40 sps:$4 sm:$0xff]  }
  0x1d   : > { %817 = vmatprep.subr.bf16.mxu1 %v2781_v14  ;;  %890 = vmatprep.subr.bf16.mxu0 %v2787_v16  ;;  %v2791_v13 = vld [vmem:[%s4181_s3 + $0x20] ss:$40 sps:$4 sm:$0xff]   ;;  %v2796_v14 = vld [vmem:[%s4181_s3 + $0x74] ss:$40 sps:$4 sm:$0xff]   ;;  %v2794_v16 = vld [vmem:[%s4181_s3 + $0x70] ss:$40 sps:$4 sm:$0xff]  }
  0xea   : > { %v2726_v18 = vpop.f32.mrb[0].mxu0  ;;  %v2730_v20 = vpop.f32.mrb[0].mxu1 }
  0xeb   : > { %v427_v19 = vadd.f32 %v2726_v18, %v2470_v17  ;;  %v418_v21 = vpop.f32.mrb[1].mxu0  ;;  %v443_v22 = vadd.f32 %v2730_v20, %v2470_v17  ;;  %v434_v24 = vpop.f32.mrb[1].mxu1  ;;  %v2798_v18 = vld [vmem:[%s4183_s5 + $0xc0] sm:$0xff]  }
  0xec   : > { %v419_v23 = vadd.f32 %v2470_v17, %v418_v21  ;;  %v2727_v25 = vpop.f32.mrb[2].mxu0  ;;  %v435_v27 = vadd.f32 %v2470_v17, %v434_v24  ;;  %v2731_v29 = vpop.f32.mrb[2].mxu1  ;;  %v2800_v20 = vld [vmem:[%s4183_s5 + $0x80] sm:$0xff]   ;;  %v2802_v21 = vld [vmem:[%s4183_s5 + $0xc8] sm:$0xff]   ;;  %v2805_v24 = vld [vmem:[%s4183_s5 + $0x50] sm:$0xff]  }
  0xed   : > { %v451_v26 = vmul.f32 0.5, %v427_v19  ;;  %v430_v28 = vadd.f32 %v2727_v25, %v2470_v17  ;;  %v421_v30 = vpop.f32.mrb[3].mxu0  ;;  %v455_v31 = vmul.f32 0.5, %v443_v22  ;;  %v446_v33 = vadd.f32 %v2731_v29, %v2470_v17  ;;  %v437_v35 = vpop.f32.mrb[3].mxu1  ;;  %v2799_v19 = vld [vmem:[%s4183_s5] sm:$0xff]   ;;  %v2803_v22 = vld [vmem:[%s4183_s5 + $0x8] sm:$0xff]  }
  0xee   : > { %v449_v32 = vmul.f32 0.5, %v419_v23  ;;  %v422_v34 = vadd.f32 %v2470_v17, %v421_v30  ;;  %v453_v36 = vmul.f32 0.5, %v435_v27  ;;  %v438_v38 = vadd.f32 %v2470_v17, %v437_v35  ;;  %v2797_v17 = vld [vmem:[%s4183_s5 + $0x40] sm:$0xff]   ;;  %v2804_v23 = vld [vmem:[%s4183_s5 + $0x88] sm:$0xff]   ;;  %v2806_v25 = vld [vmem:[%s4183_s5 + $0xd0] sm:$0xff]  }
  0xef   : > { %2877 = vtanh.f32 %v451_v26  ;;  %v452_v37 = vmul.f32 0.5, %v430_v28  ;;  %v456_v39 = vmul.f32 0.5, %v446_v33  ;;  %v2808_v27 = vld [vmem:[%s4183_s5 + $0x90] sm:$0xff]   ;;  %v2809_v28 = vld [vmem:[%s4183_s5 + $0x58] sm:$0xff]   ;;  %v2814_v33 = vld [vmem:[%s4183_s5 + $0xe0] sm:$0xff]  }
  0xf0   : > { %2879 = vtanh.f32 %v455_v31  ;;  %v450_v40 = vmul.f32 0.5, %v422_v34  ;;  %v454_v41 = vmul.f32 0.5, %v438_v38  ;;  %v2810_v29 = vld [vmem:[%s4183_s5 + $0xd8] sm:$0xff]   ;;  %v2815_v34 = vld [vmem:[%s4183_s5 + $0x20] sm:$0xff]   ;;  %v2819_v38 = vld [vmem:[%s4183_s5 + $0x28] sm:$0xff]  }
  0xf1   : > { %2881 = vtanh.f32 %v449_v32  ;;  %v2811_v30 = vld [vmem:[%s4183_s5 + $0x18] sm:$0xff]   ;;  %v2816_v35 = vld [vmem:[%s4183_s5 + $0xa0] sm:$0xff]  }
  0xf2   : > { %2883 = vtanh.f32 %v453_v36 }
  0xf3   : > { %2885 = vtanh.f32 %v452_v37 }
  0xf4   : > { %2887 = vtanh.f32 %v456_v39 }
  0xf5   : > { %2889 = vtanh.f32 %v450_v40 }
  0xf6   : > { %2891 = vtanh.f32 %v454_v41 }
  0xf9   : > { %v2878_v42 = vpop.eup %2877 }
  0xfa   : > { %v2880_v43 = vpop.eup %2879  ;;  %v467_v47 = vadd.f32 1.0, %v2878_v42  ;;  %v2823_v42 = vld [vmem:[%s4183_s5 + $0x30] sm:$0xff]  }
  0xfb   : > { %v2882_v44 = vpop.eup %2881  ;;  %v471_v45 = vadd.f32 1.0, %v2880_v43  ;;  %v2824_v43 = vld [vmem:[%s4183_s5 + $0xb0] sm:$0xff]  }
  0xfc   : > { %v2884_v46 = vpop.eup %2883  ;;  %v465_v51 = vadd.f32 1.0, %v2882_v44  ;;  %v475_v57 = vmul.f32 %v467_v47, %v451_v26  ;;  %v2807_v26 = vld [vmem:[%s4183_s5 + $0x10] sm:$0xff]   ;;  %v2825_v44 = vld [vmem:[%s4183_s5 + $0x78] sm:$0xff]  }
  0xfd   : > { %v2886_v48 = vpop.eup %2885  ;;  %v469_v49 = vadd.f32 1.0, %v2884_v46  ;;  %v479_v54 = vmul.f32 %v471_v45, %v455_v31  ;;  %v2812_v31 = vld [vmem:[%s4183_s5 + $0x98] sm:$0xff]  }
  0xfe   : > { %v2888_v50 = vpop.eup %2887  ;;  %v468_v52 = vadd.f32 1.0, %v2886_v48  ;;  %v473_v63 = vmul.f32 %v465_v51, %v449_v32  ;;  %v2813_v32 = vld [vmem:[%s4183_s5 + $0x60] sm:$0xff]   ;;  %v2826_v45 = vld [vmem:[%s4183_s5 + $0xf8] sm:$0xff]   ;;  %v509_v48 = vlaneseq }
  0xff   : > { %v2890_v53 = vpop.eup %2889  ;;  %v472_v55 = vadd.f32 1.0, %v2888_v50  ;;  %v477_v60 = vmul.f32 %v469_v49, %v453_v36  ;;  %v2817_v36 = vld [vmem:[%s4183_s5 + $0x68] sm:$0xff]   ;;  %v2827_v46 = vld [vmem:[%s4183_s5 + $0x38] sm:$0xff]   ;;  %v2829_v49 = vld [vmem:[%s4183_s5 + $0x140] sm:$0xff]  }
 0x100   : > { %v2892_v56 = vpop.eup %2891  ;;  %v476_v58 = vmul.f32 %v468_v52, %v452_v37  ;;  %v466_v59 = vadd.f32 1.0, %v2890_v53  ;;  %v2818_v37 = vld [vmem:[%s4183_s5 + $0xe8] sm:$0xff]   ;;  %v2828_v47 = vld [vmem:[%s4183_s5 + $0xb8] sm:$0xff]   ;;  %v2830_v50 = vld [vmem:[%s4183_s5 + $0x1c0] sm:$0xff]   ;;  %v3357_v51 = vshrl.u32 %v509_v48, 7 }
 0x101   : > { %v480_v61 = vmul.f32 %v472_v55, %v456_v39  ;;  %v470_v62 = vadd.f32 1.0, %v2892_v56  ;;  %v2820_v39 = vld [vmem:[%s4183_s5 + $0xa8] sm:$0xff]  }
 0x102   : > { %v482_v0 = vpack.c.bf16 %v476_v58, %v475_v57  ;;  %v474_v1 = vmul.f32 %v466_v59, %v450_v40  ;;  %v2821_v40 = vld [vmem:[%s4183_s5 + $0x70] sm:$0xff]   ;;  %v3360_v52 = vsub.s32 0, %v3357_v51  ;;  %v519_v53 = vsub.s32 2, %v3357_v51 }
 0x103   : > { %v484_v2 = vpack.c.bf16 %v480_v61, %v479_v54  ;;  %v478_v3 = vmul.f32 %v470_v62, %v454_v41  ;;  %v2822_v41 = vld [vmem:[%s4183_s5 + $0xf0] sm:$0xff]   ;;  %v3366_v54 = vld [vmem:[%s4182_s4] sm:$0xff]  ;;  %v515_v55 = vsub.s32 1, %v3357_v51  ;;  %v523_v56 = vsub.s32 3, %v3357_v51 }
 0x104   : > { %v481_v5 = vpack.c.bf16 %v474_v1, %v473_v63  ;;  %4188 = vst [vmem:[#allocation3_spill] sm:$0xff] %v3360_v52  ;;  %v3372_v57 = vrot.slane %v3366_v54, %v3360_v52  ;;  %v3375_v58 = vrot.slane %v3366_v54, %v519_v53 }
 0x105   : > { %v483_v7 = vpack.c.bf16 %v478_v3, %v477_v60  ;;  %v3380_v59 = vrot.slane %v3366_v54, %v515_v55  ;;  %v3383_v60 = vrot.slane %v3366_v54, %v523_v56 }
 0x106   : > { %2501 = vmatmul.mubr.msk.bf16.vlgmr.msra.gmra.mrb[4].mxu1 %vm371_vm0, %v481_v5  ;;  %2505 = vmatmul.mubr.msk.bf16.vlgmr.msra.gmra.mrb[4].mxu0 %vm371_vm0, %v481_v5 }
 0x107   : > { %818 = vmatpush1.bf16.msra.mxu1 %v2779_v4  ;;  %713 = vmatprep.mubr.bf16.mxu1 %v3077_v15 }
 0x108   : > { %786 = vmatprep.mubr.bf16.mxu0 %v3077_v15  ;;  %819 = vmatprep.subr.bf16.mxu1 %v2784_v6 }
 0x109   : > { %891 = vmatpush1.bf16.msra.mxu0 %v2785_v8 }
 0x10a   : > { %892 = vmatprep.subr.bf16.mxu0 %v2790_v9 }
 0x10b   : > { %820 = vmatpush1.bf16.msra.mxu1 %v2782_v10 }
 0x10c   : > { %963 = vmatprep.subr.bf16.mxu1 %v2793_v11 }
 0x10d   : > { %893 = vmatpush1.bf16.msra.mxu0 %v2788_v12 }
 0x10e   : > { %2502 = vmatmul.mubr.msk.bf16.gmra.mrb[8].mxu1 %vm371_vm0, %v482_v0  ;;  %2506 = vmatmul.mubr.msk.bf16.gmra.mrb[8].mxu0 %vm371_vm0, %v482_v0 }
 0x10f   : > { %723 = vmatprep.mubr.bf16.mxu1 %v3077_v15  ;;  %796 = vmatprep.mubr.bf16.mxu0 %v3077_v15 }
 0x110   : > { %2610 = vmatprep.subr.bf16.mxu0 %v2797_v17 }
 0x116   : > { %2503 = vmatmul.mubr.msk.bf16.gmra.mrb[12].mxu1 %vm371_vm0, %v483_v7  ;;  %2507 = vmatmul.mubr.msk.bf16.gmra.mrb[12].mxu0 %vm371_vm0, %v483_v7 }
 0x117   : > { %733 = vmatprep.mubr.bf16.mxu1 %v3077_v15  ;;  %806 = vmatprep.mubr.bf16.mxu0 %v3077_v15 }
 0x11e   : > { %2504 = vmatmul.mubr.msk.bf16.gmra.mrb[16].mxu1 %vm371_vm0, %v484_v2  ;;  %2508 = vmatmul.mubr.msk.bf16.gmra.mrb[16].mxu0 %vm371_vm0, %v484_v2 }
 0x11f   : > { %849 = vmatprep.mubr.bf16.mxu1 %v3077_v15  ;;  %922 = vmatprep.mubr.bf16.mxu0 %v3077_v15 }
 0x126   : > { %2509 = vmatmul.mubr.msk.bf16.vlgmr.msra.gmra.mrb[20].mxu1 %vm371_vm0, %v481_v5  ;;  %2513 = vmatmul.mubr.msk.bf16.vlgmr.msra.gmra.mrb[20].mxu0 %vm371_vm0, %v481_v5 }
 0x127   : > { %964 = vmatpush1.bf16.msra.mxu1 %v2791_v13  ;;  %859 = vmatprep.mubr.bf16.mxu1 %v3077_v15 }
 0x128   : > { %932 = vmatprep.mubr.bf16.mxu0 %v3077_v15  ;;  %965 = vmatprep.subr.bf16.mxu1 %v2796_v14 }
 0x129   : > { %2611 = vmatpush3.bf16.msra.mxu0 %v2799_v19 }
 0x12b   : > { %966 = vmatpush1.bf16.msra.mxu1 %v2794_v16 }
 0x12c   : > { %2632 = vmatprep.subr.bf16.mxu1 %v2798_v18 }
 0x12e   : > { %2510 = vmatmul.mubr.msk.bf16.gmra.mrb[24].mxu1 %vm371_vm0, %v482_v0  ;;  %2514 = vmatmul.mubr.msk.bf16.gmra.mrb[24].mxu0 %vm371_vm0, %v482_v0 }
 0x12f   : > { %869 = vmatprep.mubr.bf16.mxu1 %v3077_v15  ;;  %942 = vmatprep.mubr.bf16.mxu0 %v3077_v15 }
 0x136   : > { %2511 = vmatmul.mubr.msk.bf16.gmra.mrb[28].mxu1 %vm371_vm0, %v483_v7  ;;  %2515 = vmatmul.mubr.msk.bf16.gmra.mrb[28].mxu0 %vm371_vm0, %v483_v7 }
 0x137   : > { %879 = vmatprep.mubr.bf16.mxu1 %v3077_v15  ;;  %952 = vmatprep.mubr.bf16.mxu0 %v3077_v15 }
 0x13e   : > { %2512 = vmatmul.mubr.msk.bf16.gmra.mrb[32].mxu1 %vm371_vm0, %v484_v2  ;;  %2516 = vmatmul.mubr.msk.bf16.gmra.mrb[32].mxu0 %vm371_vm0, %v484_v2 }
 0x13f   : > { %995 = vmatprep.mubr.bf16.mxu1 %v3077_v15 }
 0x146   : > { %2517 = vmatmul.mubr.msk.bf16.vlgmr.msra.gmra.mrb[36].mxu1 %vm371_vm0, %v481_v5 }
 0x147   : > { %1005 = vmatprep.mubr.bf16.mxu1 %v3077_v15  ;;  %2633 = vmatpush3.bf16.msra.mxu1 %v2800_v20 }
 0x148   : > { %2634 = vmatprep.subr.bf16.mxu1 %v2802_v21 }
 0x14b   : > { %2635 = vmatpush3.bf16.msra.mxu1 %v2804_v23  ;;  %v527_v23 = vsub.s32 4, %v3357_v51 }
 0x14c   : > { %2636 = vmatprep.subr.bf16.mxu1 %v2806_v25 }
 0x14e   : > { %2518 = vmatmul.mubr.msk.bf16.gmra.mrb[40].mxu1 %vm371_vm0, %v482_v0 }
 0x14f   : > { %1015 = vmatprep.mubr.bf16.mxu1 %v3077_v15  ;;  %2637 = vmatpush3.bf16.msra.mxu1 %v2808_v27 }
 0x150   : > { %2638 = vmatprep.subr.bf16.mxu1 %v2810_v29  ;;  %v531_v29 = vsub.s32 5, %v3357_v51 }
 0x152   : > { %v3453_v53 = vrot.slane %v3366_v54, %v531_v29 }
 0x153   : > { %2639 = vmatpush3.bf16.msra.mxu1 %v2812_v31 }
 0x154   : > { %2640 = vmatprep.subr.bf16.mxu1 %v2814_v33 }
 0x156   : > { %2519 = vmatmul.mubr.msk.bf16.gmra.mrb[44].mxu1 %vm371_vm0, %v483_v7 }
 0x157   : > { %1025 = vmatprep.mubr.bf16.mxu1 %v3077_v15  ;;  %v2801_v15 = vld [vmem:[%s4183_s5 + $0x48] sm:$0xff]   ;;  %2641 = vmatpush3.bf16.msra.mxu1 %v2816_v35 }
 0x158   : > { %2612 = vmatprep.subr.bf16.mxu0 %v2801_v15  ;;  %2642 = vmatprep.subr.bf16.mxu1 %v2818_v37 }
 0x159   : > { %2613 = vmatpush3.bf16.msra.mxu0 %v2803_v22 }
 0x15a   : > { %2614 = vmatprep.subr.bf16.mxu0 %v2805_v24  ;;  %v535_v24 = vsub.s32 6, %v3357_v51 }
 0x15b   : > { %2643 = vmatpush3.bf16.msra.mxu1 %v2820_v39 }
 0x15c   : > { %2644 = vmatprep.subr.bf16.mxu1 %v2822_v41 }
 0x15d   : > { %2615 = vmatpush3.bf16.msra.mxu0 %v2807_v26 }
 0x15e   : > { %2520 = vmatmul.mubr.msk.bf16.gmra.mrb[48].mxu1 %vm371_vm0, %v484_v2  ;;  %2616 = vmatprep.subr.bf16.mxu0 %v2809_v28 }
 0x15f   : > { %2645 = vmatpush3.bf16.msra.mxu1 %v2824_v43 }
 0x160   : > { %2646 = vmatprep.subr.bf16.mxu1 %v2826_v45 }
 0x161   : > { %2617 = vmatpush3.bf16.msra.mxu0 %v2811_v30 }
 0x162   : > { %2618 = vmatprep.subr.bf16.mxu0 %v2813_v32 }
 0x163   : > { %2647 = vmatpush3.bf16.msra.mxu1 %v2828_v47  ;;  %v3444_v47 = vrot.slane %v3366_v54, %v527_v23 }
 0x164   : > { %2676 = vmatprep.subr.bf16.mxu1 %v2830_v50  ;;  %v3450_v50 = vrot.slane %v3366_v54, %v535_v24 }
 0x165   : > { %2619 = vmatpush3.bf16.msra.mxu0 %v2815_v34  ;;  %v539_v34 = vsub.s32 7, %v3357_v51 }
 0x166   : > { %2620 = vmatprep.subr.bf16.mxu0 %v2817_v36 }
 0x169   : > { %2621 = vmatpush3.bf16.msra.mxu0 %v2819_v38 }
 0x16a   : > { %2622 = vmatprep.subr.bf16.mxu0 %v2821_v40 }
 0x16d   : > { %2623 = vmatpush3.bf16.msra.mxu0 %v2823_v42 }
 0x16e   : > { %2624 = vmatprep.subr.bf16.mxu0 %v2825_v44 }
 0x171   : > { %2625 = vmatpush3.bf16.msra.mxu0 %v2827_v46 }
 0x172   : > { %2654 = vmatprep.subr.bf16.mxu0 %v2829_v49 }
 0x1d9   : > { %v705_v61 = vpop.f32.mrb[4].mxu1  ;;  %v778_v62 = vpop.f32.mrb[4].mxu0 }
 0x1da   : > { %v706_v63 = vadd.f32 %v705_v61, %v3372_v57  ;;  %v779_v0 = vadd.f32 %v778_v62, %v3375_v58  ;;  %v707_v1 = vpop.f32.mrb[5].mxu1  ;;  %v780_v2 = vpop.f32.mrb[5].mxu0 }
 0x1db   : > { %v708_v3 = vadd.f32 %v707_v1, %v3380_v59  ;;  %v781_v4 = vadd.f32 %v780_v2, %v3383_v60  ;;  %v709_v5 = vpop.f32.mrb[6].mxu1  ;;  %v782_v6 = vpop.f32.mrb[6].mxu0  ;;  %v3459_v1 = vrot.slane %v3366_v54, %v539_v34 }
 0x1dc   : > { %v3389_v7 = vmul.f32 0.5, %v706_v63  ;;  %v3391_v8 = vmul.f32 0.5, %v779_v0  ;;  %v710_v9 = vadd.f32 %v709_v5, %v3372_v57  ;;  %v783_v10 = vadd.f32 %v782_v6, %v3375_v58  ;;  %v711_v11 = vpop.f32.mrb[7].mxu1  ;;  %v784_v12 = vpop.f32.mrb[7].mxu0 }
 0x1dd   : > { %v3395_v13 = vmul.f32 0.5, %v708_v3  ;;  %v3397_v14 = vmul.f32 0.5, %v781_v4  ;;  %v712_v16 = vadd.f32 %v711_v11, %v3380_v59  ;;  %v785_v17 = vadd.f32 %v784_v12, %v3383_v60 }
 0x1de   : > { %2893 = vtanh.f32 %v3389_v7  ;;  %v3402_v18 = vmul.f32 0.5, %v710_v9  ;;  %v3405_v19 = vmul.f32 0.5, %v783_v10 }
 0x1df   : > { %2895 = vtanh.f32 %v3391_v8  ;;  %v3408_v20 = vmul.f32 0.5, %v712_v16  ;;  %v3411_v15 = vmul.f32 0.5, %v785_v17 }
 0x1e0   : > { %2897 = vtanh.f32 %v3395_v13 }
 0x1e1   : > { %2899 = vtanh.f32 %v3397_v14  ;;  %v715_v21 = vpop.f32.mrb[8].mxu1  ;;  %v788_v22 = vpop.f32.mrb[8].mxu0 }
 0x1e2   : > { %2901 = vtanh.f32 %v3402_v18  ;;  %v716_v25 = vadd.f32 %v715_v21, %v3372_v57  ;;  %v789_v26 = vadd.f32 %v788_v22, %v3375_v58  ;;  %v717_v27 = vpop.f32.mrb[9].mxu1  ;;  %v790_v28 = vpop.f32.mrb[9].mxu0 }
 0x1e3   : > { %2903 = vtanh.f32 %v3405_v19  ;;  %v718_v30 = vadd.f32 %v717_v27, %v3380_v59  ;;  %v791_v31 = vadd.f32 %v790_v28, %v3383_v60  ;;  %v719_v32 = vpop.f32.mrb[10].mxu1  ;;  %v792_v33 = vpop.f32.mrb[10].mxu0 }
 0x1e4   : > { %2905 = vtanh.f32 %v3408_v20  ;;  %v3424_v35 = vmul.f32 0.5, %v716_v25  ;;  %v3426_v36 = vmul.f32 0.5, %v789_v26  ;;  %v720_v37 = vadd.f32 %v719_v32, %v3372_v57  ;;  %v721_v38 = vpop.f32.mrb[11].mxu1  ;;  %v794_v39 = vpop.f32.mrb[11].mxu0 }
 0x1e5   : > { %2907 = vtanh.f32 %v3411_v15  ;;  %v3430_v40 = vmul.f32 0.5, %v718_v30  ;;  %v3432_v41 = vmul.f32 0.5, %v791_v31  ;;  %v793_v42 = vadd.f32 %v792_v33, %v3375_v58 }
 0x1e6   : > { %2909 = vtanh.f32 %v3424_v35  ;;  %v3436_v43 = vmul.f32 0.5, %v720_v37  ;;  %v722_v44 = vadd.f32 %v721_v38, %v3380_v59  ;;  %v795_v45 = vadd.f32 %v794_v39, %v3383_v60 }
 0x1e7   : > { %2911 = vtanh.f32 %v3426_v36  ;;  %v3441_v46 = vmul.f32 0.5, %v793_v42 }
 0x1e8   : > { %v2894_v48 = vpop.eup %2893  ;;  %2913 = vtanh.f32 %v3430_v40  ;;  %v3447_v49 = vmul.f32 0.5, %v722_v44  ;;  %v3456_v62 = vmul.f32 0.5, %v795_v45 }
 0x1e9   : > { %v2896_v56 = vpop.eup %2895  ;;  %v1196_v61 = vadd.f32 1.0, %v2894_v48  ;;  %2915 = vtanh.f32 %v3432_v41  ;;  %v725_v63 = vpop.f32.mrb[12].mxu1 }
 0x1ea   : > { %v798_v0 = vpop.f32.mrb[12].mxu0  ;;  %v2898_v2 = vpop.eup %2897  ;;  %v1198_v3 = vadd.f32 1.0, %v2896_v56  ;;  %2917 = vtanh.f32 %v3436_v43  ;;  %v726_v4 = vadd.f32 %v725_v63, %v3372_v57 }
 0x1eb   : > { %v799_v5 = vadd.f32 %v798_v0, %v3375_v58  ;;  %v727_v6 = vpop.f32.mrb[13].mxu1  ;;  %v800_v9 = vpop.f32.mrb[13].mxu0  ;;  %v1276_v11 = vmul.f32 %v1196_v61, %v3389_v7  ;;  %v1197_v12 = vadd.f32 1.0, %v2898_v2  ;;  %2919 = vtanh.f32 %v3441_v46 }
 0x1ec   : > { %v2900_v10 = vpop.eup %2899  ;;  %v728_v16 = vadd.f32 %v727_v6, %v3380_v59  ;;  %v729_v54 = vpop.f32.mrb[14].mxu1  ;;  %v1278_v22 = vmul.f32 %v1198_v3, %v3391_v8  ;;  %2921 = vtanh.f32 %v3447_v49  ;;  %v3469_v24 = vmul.f32 0.5, %v726_v4 }
 0x1ed   : > { %v802_v17 = vpop.f32.mrb[14].mxu0  ;;  %v2902_v21 = vpop.eup %2901  ;;  %v1199_v23 = vadd.f32 1.0, %v2900_v10  ;;  %v1277_v7 = vmul.f32 %v1197_v12, %v3395_v13  ;;  %2923 = vtanh.f32 %v3456_v62  ;;  %v3475_v29 = vmul.f32 0.5, %v799_v5 }
 0x1ee   : > { %v731_v25 = vpop.f32.mrb[15].mxu1  ;;  %v3471_v26 = vpop.f32.mrb[15].mxu0  ;;  %v1206_v28 = vadd.f32 1.0, %v2902_v21  ;;  %2925 = vtanh.f32 %v3469_v24  ;;  %v3479_v32 = vmul.f32 0.5, %v728_v16  ;;  %v801_v13 = vadd.f32 %v800_v9, %v3383_v60 }
 0x1ef   : > { %v2904_v27 = vpop.eup %2903  ;;  %v1279_v31 = vmul.f32 %v1199_v23, %v3397_v14  ;;  %2927 = vtanh.f32 %v3475_v29  ;;  %v730_v14 = vadd.f32 %v729_v54, %v3372_v57 }
 0x1f0   : > { %v2906_v30 = vpop.eup %2905  ;;  %v1208_v8 = vadd.f32 1.0, %v2904_v27  ;;  %v1286_v34 = vmul.f32 %v1206_v28, %v3402_v18  ;;  %2929 = vtanh.f32 %v3479_v32  ;;  %v3488_v61 = vmul.f32 0.5, %v801_v13 }
 0x1f1   : > { %v2908_v33 = vpop.eup %2907  ;;  %v1207_v37 = vadd.f32 1.0, %v2906_v30  ;;  %v3490_v18 = vpop.f32.mrb[16].mxu1  ;;  %v3495_v4 = vmul.f32 0.5, %v730_v14 }
 0x1f2   : > { %v2910_v38 = vpop.eup %2909  ;;  %v1288_v39 = vmul.f32 %v1208_v8, %v3405_v19  ;;  %v1209_v42 = vadd.f32 1.0, %v2908_v33  ;;  %v1366_v45 = vadd.f32 %v1286_v34, %v1276_v11  ;;  %v3492_v63 = vpop.f32.mrb[16].mxu0  ;;  %2931 = vtanh.f32 %v3488_v61 }
 0x1f3   : > { %v2912_v44 = vpop.eup %2911  ;;  %v1287_v48 = vmul.f32 %v1207_v37, %v3408_v20  ;;  %v1216_v56 = vadd.f32 1.0, %v2910_v38  ;;  %v3497_v5 = vpop.f32.mrb[17].mxu1  ;;  %2933 = vtanh.f32 %v3495_v4  ;;  %v803_v8 = vadd.f32 %v802_v17, %v3375_v58 }
 0x1f4   : > { %v2914_v0 = vpop.eup %2913  ;;  %v1380_v2 = vadd.f32 %v1288_v39, %v1278_v22  ;;  %v1289_v19 = vmul.f32 %v1209_v42, %v3411_v15  ;;  %v1218_v3 = vadd.f32 1.0, %v2912_v44  ;;  %v3499_v6 = vpop.f32.mrb[17].mxu0 }
 0x1f5   : > { %v2916_v9 = vpop.eup %2915  ;;  %v1373_v20 = vadd.f32 %v1287_v48, %v1277_v7  ;;  %v1296_v10 = vmul.f32 %v1216_v56, %v3424_v35  ;;  %v1217_v11 = vadd.f32 1.0, %v2914_v0  ;;  %v3503_v12 = vpop.f32.mrb[18].mxu1  ;;  %v3518_v14 = vmul.f32 0.5, %v803_v8 }
 0x1f6   : > { %v3505_v16 = vpop.f32.mrb[18].mxu0  ;;  %v2918_v54 = vpop.eup %2917  ;;  %v1387_v15 = vadd.f32 %v1289_v19, %v1279_v31  ;;  %v1298_v21 = vmul.f32 %v1218_v3, %v3426_v36  ;;  %v1219_v22 = vadd.f32 1.0, %v2916_v9  ;;  %v732_v36 = vadd.f32 %v731_v25, %v3380_v59 }
 0x1f7   : > { %v3509_v23 = vpop.f32.mrb[19].mxu1  ;;  %v3511_v27 = vpop.f32.mrb[19].mxu0  ;;  %v1367_v35 = vadd.f32 %v1366_v45, %v1296_v10  ;;  %v1297_v28 = vmul.f32 %v1217_v11, %v3430_v40  ;;  %v1226_v30 = vadd.f32 1.0, %v2918_v54  ;;  %2935 = vtanh.f32 %v3518_v14 }
 0x1f8   : > { %v2920_v7 = vpop.eup %2919  ;;  %v1381_v34 = vadd.f32 %v1380_v2, %v1298_v21  ;;  %v1299_v31 = vmul.f32 %v1219_v22, %v3432_v41  ;;  %v3521_v17 = vmul.f32 0.5, %v732_v36 }
 0x1f9   : > { %v2922_v33 = vpop.eup %2921  ;;  %v1228_v37 = vadd.f32 1.0, %v2920_v7  ;;  %v1374_v38 = vadd.f32 %v1373_v20, %v1297_v28  ;;  %v1306_v39 = vmul.f32 %v1226_v30, %v3436_v43  ;;  %v851_v25 = vpop.f32.mrb[20].mxu1  ;;  %v809_v28 = vadd.f32 %v3492_v63, %v3375_v58 }
 0x1fa   : > { %v2924_v13 = vpop.eup %2923  ;;  %v1227_v42 = vadd.f32 1.0, %v2922_v33  ;;  %v1388_v45 = vadd.f32 %v1387_v15, %v1299_v31  ;;  %v924_v19 = vpop.f32.mrb[20].mxu0  ;;  %2937 = vtanh.f32 %v3521_v17  ;;  %v738_v31 = vadd.f32 %v3497_v5, %v3380_v59 }
 0x1fb   : > { %v2926_v44 = vpop.eup %2925  ;;  %v1308_v40 = vmul.f32 %v1228_v37, %v3441_v46  ;;  %v1229_v48 = vadd.f32 1.0, %v2924_v13  ;;  %v1368_v0 = vadd.f32 %v1367_v35, %v1306_v39  ;;  %v853_v46 = vpop.f32.mrb[21].mxu1  ;;  %v736_v35 = vadd.f32 %v3490_v18, %v3372_v57 }
 0x1fc   : > { %v2928_v56 = vpop.eup %2927  ;;  %v1307_v41 = vmul.f32 %v1227_v42, %v3447_v49  ;;  %v1236_v2 = vadd.f32 1.0, %v2926_v44  ;;  %v3527_v10 = vpop.f32.mrb[21].mxu0  ;;  %v805_v49 = vadd.f32 %v3471_v26, %v3383_v60  ;;  %v3552_v13 = vmul.f32 0.5, %v809_v28 }
 0x1fd   : > { %v2930_v43 = vpop.eup %2929  ;;  %v1382_v3 = vadd.f32 %v1381_v34, %v1308_v40  ;;  %v1309_v9 = vmul.f32 %v1229_v48, %v3456_v62  ;;  %v1238_v20 = vadd.f32 1.0, %v2928_v56  ;;  %v3532_v21 = vpop.f32.mrb[22].mxu1  ;;  %v3550_v18 = vmul.f32 0.5, %v736_v35 }
 0x1fe   : > { %v1375_v11 = vadd.f32 %v1374_v38, %v1307_v41  ;;  %v1316_v54 = vmul.f32 %v1236_v2, %v3469_v24  ;;  %v1237_v15 = vadd.f32 1.0, %v2930_v43  ;;  %v3534_v22 = vpop.f32.mrb[22].mxu0  ;;  %v3541_v30 = vpop.f32.mrb[23].mxu1  ;;  %v3546_v34 = vmul.f32 0.5, %v805_v49 }
 0x1ff   : > { %v1389_v7 = vadd.f32 %v1388_v45, %v1309_v9  ;;  %v1318_v62 = vmul.f32 %v1238_v20, %v3475_v29  ;;  %v3543_v24 = vpop.f32.mrb[23].mxu0  ;;  %v2932_v8 = vpop.eup %2931  ;;  %v3555_v39 = vmul.f32 0.5, %v738_v31  ;;  %v811_v5 = vadd.f32 %v3499_v6, %v3383_v60 }
 0x200   : > { %v1369_v33 = vadd.f32 %v1368_v0, %v1316_v54  ;;  %v1317_v26 = vmul.f32 %v1237_v15, %v3479_v32  ;;  %v2934_v29 = vpop.eup %2933  ;;  %v1239_v36 = vadd.f32 1.0, %v2932_v8  ;;  %2939 = vtanh.f32 %v3546_v34 }
 0x201   : > { %v1383_v37 = vadd.f32 %v1382_v3, %v1318_v62  ;;  %v1246_v38 = vadd.f32 1.0, %v2934_v29  ;;  %2941 = vtanh.f32 %v3550_v18  ;;  %v740_v42 = vadd.f32 %v3503_v12, %v3372_v57  ;;  %v3569_v48 = vpop.f32.mrb[24].mxu1 }
 0x202   : > { %v1376_v63 = vadd.f32 %v1375_v11, %v1317_v26  ;;  %v1319_v32 = vmul.f32 %v1239_v36, %v3488_v61  ;;  %2943 = vtanh.f32 %v3552_v13  ;;  %v813_v45 = vadd.f32 %v3505_v16, %v3375_v58  ;;  %v3571_v61 = vpop.f32.mrb[24].mxu0  ;;  %v2936_v58 = vpop.eup %2935 }
 0x203   : > { %v1326_v44 = vmul.f32 %v1246_v38, %v3495_v4  ;;  %v742_v40 = vadd.f32 %v3509_v23, %v3380_v59  ;;  %2945 = vtanh.f32 %v3555_v39  ;;  %v3576_v6 = vmul.f32 0.5, %v811_v5  ;;  %v3580_v4 = vpop.f32.mrb[25].mxu1  ;;  %v3582_v12 = vpop.f32.mrb[25].mxu0 }
 0x204   : > { %v3573_v56 = vadd.f32 %v1389_v7, %v1319_v32  ;;  %v3578_v57 = vmul.f32 0.5, %v740_v42  ;;  %v3586_v59 = vmul.f32 0.5, %v813_v45  ;;  %v815_v0 = vadd.f32 %v3511_v27, %v3383_v60  ;;  %v3592_v41 = vpop.f32.mrb[26].mxu1  ;;  %v3594_v2 = vpop.f32.mrb[26].mxu0 }
 0x205   : > { %v3584_v16 = vadd.f32 %v1369_v33, %v1326_v44  ;;  %v3588_v23 = vmul.f32 0.5, %v742_v40  ;;  %v2938_v43 = vpop.eup %2937  ;;  %v1248_v3 = vadd.f32 1.0, %v2936_v58  ;;  %2947 = vtanh.f32 %v3576_v6  ;;  %v3599_v11 = vpop.f32.mrb[27].mxu1 }
 0x206   : > { %v852_v9 = vadd.f32 %v851_v25, %v3444_v47  ;;  %v925_v20 = vadd.f32 %v924_v19, %v3450_v50  ;;  %v3601_v54 = vpop.f32.mrb[27].mxu0  ;;  %v1247_v15 = vadd.f32 1.0, %v2938_v43  ;;  %2949 = vtanh.f32 %v3578_v57 }
 0x207   : > { %v3604_v60 = vmul.f32 0.5, %v815_v0  ;;  %v854_v27 = vadd.f32 %v853_v46, %v3453_v53  ;;  %v1328_v49 = vmul.f32 %v1248_v3, %v3518_v14  ;;  %2951 = vtanh.f32 %v3586_v59 }
 0x208   : > { %v3609_v7 = vmul.f32 0.5, %v852_v9  ;;  %v3611_v25 = vmul.f32 0.5, %v925_v20  ;;  %v1327_v19 = vmul.f32 %v1247_v15, %v3521_v17  ;;  %2953 = vtanh.f32 %v3588_v23 }
 0x209   : > { %v3615_v62 = vmul.f32 0.5, %v854_v27  ;;  %v927_v35 = vadd.f32 %v3527_v10, %v3459_v1  ;;  %v1384_v28 = vadd.f32 %v1383_v37, %v1328_v49  ;;  %2955 = vtanh.f32 %v3604_v60  ;;  %v3629_v31 = vpop.f32.mrb[28].mxu1  ;;  %v3631_v10 = vpop.f32.mrb[28].mxu0 }
 0x20a   : > { %v856_v14 = vadd.f32 %v3532_v21, %v3444_v47  ;;  %v929_v46 = vadd.f32 %v3534_v22, %v3450_v50  ;;  %v2940_v8 = vpop.eup %2939  ;;  %v1377_v33 = vadd.f32 %v1376_v63, %v1327_v19  ;;  %2957 = vtanh.f32 %v3609_v7  ;;  %v3638_v36 = vpop.f32.mrb[29].mxu1 }
 0x20b   : > { %v3625_v17 = vmul.f32 0.5, %v927_v35  ;;  %v858_v26 = vadd.f32 %v3541_v30, %v3453_v53  ;;  %v2942_v29 = vpop.eup %2941  ;;  %v1249_v37 = vadd.f32 1.0, %v2940_v8  ;;  %2959 = vtanh.f32 %v3611_v25  ;;  %v3640_v63 = vpop.f32.mrb[29].mxu0 }
 0x20c   : > { %v3634_v21 = vmul.f32 0.5, %v856_v14  ;;  %v3636_v22 = vmul.f32 0.5, %v929_v46  ;;  %v2944_v38 = vpop.eup %2943  ;;  %v1256_v32 = vadd.f32 1.0, %v2942_v29  ;;  %2961 = vtanh.f32 %v3615_v62  ;;  %v3647_v42 = vpop.f32.mrb[30].mxu1  ;;  %v506_v14 = vld [vmem:[%s4182_s4 + $0x8] sm:$0x3] }
 0x20d   : > { %v3643_v30 = vmul.f32 0.5, %v858_v26  ;;  %v931_v5 = vadd.f32 %v3543_v24, %v3459_v1  ;;  %v3649_v44 = vpop.f32.mrb[30].mxu0  ;;  %v2946_v45 = vpop.eup %2945  ;;  %v1329_v40 = vmul.f32 %v1249_v37, %v3546_v34  ;;  %v1258_v58 = vadd.f32 1.0, %v2944_v38 }
 0x20e   : > { %2963 = vtanh.f32 %v3625_v17  ;;  %v862_v0 = vadd.f32 %v3569_v48, %v3444_v47  ;;  %v3655_v43 = vpop.f32.mrb[31].mxu1  ;;  %v3657_v3 = vpop.f32.mrb[31].mxu0  ;;  %v1336_v9 = vmul.f32 %v1256_v32, %v3550_v18  ;;  %v1257_v24 = vadd.f32 1.0, %v2946_v45 }
 0x20f   : > { %2965 = vtanh.f32 %v3634_v21  ;;  %v3661_v20 = vmul.f32 0.5, %v931_v5  ;;  %v2948_v15 = vpop.eup %2947  ;;  %v1391_v34 = vadd.f32 %v3573_v56, %v1329_v40  ;;  %v1338_v27 = vmul.f32 %v1258_v58, %v3552_v13 }
 0x210   : > { %2967 = vtanh.f32 %v3636_v22  ;;  %v3666_v49 = vmul.f32 0.5, %v862_v0  ;;  %v2950_v48 = vpop.eup %2949  ;;  %v1371_v19 = vadd.f32 %v3584_v16, %v1336_v9  ;;  %v1337_v35 = vmul.f32 %v1257_v24, %v3555_v39 }
 0x211   : > { %v1259_v18 = vadd.f32 1.0, %v2948_v15  ;;  %2969 = vtanh.f32 %v3643_v30  ;;  %v2952_v46 = vpop.eup %2951  ;;  %v1385_v56 = vadd.f32 %v1384_v28, %v1338_v27  ;;  %v1266_v8 = vadd.f32 1.0, %v2950_v48  ;;  %v3679_v37 = vpop.f32.mrb[32].mxu1 }
 0x212   : > { %2971 = vtanh.f32 %v3661_v20  ;;  %v935_v13 = vadd.f32 %v3571_v61, %v3450_v50  ;;  %v2954_v26 = vpop.eup %2953  ;;  %v1378_v29 = vadd.f32 %v1377_v33, %v1337_v35  ;;  %v1268_v39 = vadd.f32 1.0, %v2952_v46  ;;  %v3681_v38 = vpop.f32.mrb[32].mxu0 }
 0x213   : > { %v1339_v16 = vmul.f32 %v1259_v18, %v3576_v6  ;;  %2973 = vtanh.f32 %v3666_v49  ;;  %v2956_v32 = vpop.eup %2955  ;;  %v1346_v28 = vmul.f32 %v1266_v8, %v3578_v57  ;;  %v1267_v5 = vadd.f32 1.0, %v2954_v26  ;;  %v3686_v40 = vpop.f32.mrb[33].mxu1 }
 0x214   : > { %v3684_v45 = vmul.f32 0.5, %v935_v13  ;;  %v3688_v61 = vpop.f32.mrb[33].mxu0  ;;  %v3691_v33 = vrot.slane %v506_v14, %v3360_v52  ;;  %v2958_v6 = vpop.eup %2957  ;;  %v1348_v0 = vmul.f32 %v1268_v39, %v3586_v59  ;;  %v1269_v9 = vadd.f32 1.0, %v2956_v32 }
 0x215   : > { %v1392_v58 = vadd.f32 %v1391_v34, %v1339_v16  ;;  %v864_v24 = vadd.f32 %v3580_v4, %v3453_v53  ;;  %v3696_v15 = vpop.f32.mrb[34].mxu1  ;;  %v3698_v57 = vpop.f32.mrb[34].mxu0  ;;  %v1372_v48 = vadd.f32 %v1371_v19, %v1346_v28  ;;  %v1347_v35 = vmul.f32 %v1267_v5, %v3588_v23 }
 0x216   : > { %4189 = vst [vmem:[#allocation4_spill] sm:$0xff] %v3691_v33  ;;  %v2960_v27 = vpop.eup %2959  ;;  %v1200_v18 = vadd.f32 1.0, %v2958_v6  ;;  %2975 = vtanh.f32 %v3684_v45  ;;  %v3702_v46 = vpop.f32.mrb[35].mxu1  ;;  %v1386_v8 = vadd.f32 %v1385_v56, %v1348_v0  ;;  %v1349_v13 = vmul.f32 %v1269_v9, %v3604_v60 }
 0x217   : > { %v3704_v34 = vpop.f32.mrb[35].mxu0  ;;  %v2962_v59 = vpop.eup %2961  ;;  %v1202_v4 = vadd.f32 1.0, %v2960_v27  ;;  %v3709_v26 = vrot.slane %v506_v14, %v515_v55  ;;  %v1469_v19 = vrot.slane %v1372_v48, 4  ;;  %v1379_v39 = vadd.f32 %v1378_v29, %v1347_v35 }
 0x218   : > { %v2964_v16 = vpop.eup %2963  ;;  %v1201_v23 = vadd.f32 1.0, %v2962_v59  ;;  %v937_v32 = vadd.f32 %v3582_v12, %v3459_v1  ;;  %v1481_v5 = vrot.slane %v1386_v8, 4  ;;  %v1393_v6 = vadd.f32 %v1392_v58, %v1349_v13 }
 0x219   : > { %v2966_v28 = vpop.eup %2965  ;;  %v1203_v52 = vadd.f32 1.0, %v2964_v16  ;;  %v3713_v33 = vmul.f32 0.5, %v864_v24  ;;  %v1470_v60 = vadd.f32 %v1469_v19, %v1372_v48  ;;  %v1280_v0 = vmul.f32 %v1200_v18, %v3609_v7  ;;  %v3718_v12 = vpop.f32.mrb[36].mxu1 }
 0x21a   : > { %v2968_v56 = vpop.eup %2967  ;;  %v1282_v51 = vmul.f32 %v1202_v4, %v3611_v25  ;;  %v1210_v55 = vadd.f32 1.0, %v2966_v28  ;;  %v1482_v9 = vadd.f32 %v1481_v5, %v1386_v8  ;;  %v1475_v29 = vrot.slane %v1379_v39, 4  ;;  %v3721_v48 = vpop.f32.mrb[37].mxu1 }
 0x21b   : > { %v2970_v14 = vpop.eup %2969  ;;  %v1281_v27 = vmul.f32 %v1201_v23, %v3615_v62  ;;  %v1212_v35 = vadd.f32 1.0, %v2968_v56  ;;  %v1471_v58 = vrot.slane %v1470_v60, 2  ;;  %v1487_v13 = vrot.slane %v1393_v6, 4  ;;  %4190 = vst [vmem:[#allocation5_spill] sm:$0xff] %v3721_v48  ;;  %v3725_v19 = vpop.f32.mrb[38].mxu1 }
 0x21c   : > { %v2972_v59 = vpop.eup %2971  ;;  %v1290_v24 = vmul.f32 %v1210_v55, %v3634_v21  ;;  %v1211_v16 = vadd.f32 1.0, %v2970_v14  ;;  %v1483_v18 = vrot.slane %v1482_v9, 2  ;;  %v1283_v25 = vmul.f32 %v1203_v52, %v3625_v17  ;;  %v3728_v56 = vpop.f32.mrb[39].mxu1 }
 0x21d   : > { %v2974_v7 = vpop.eup %2973  ;;  %v1292_v8 = vmul.f32 %v1212_v35, %v3636_v22  ;;  %v1213_v4 = vadd.f32 1.0, %v2972_v59  ;;  %v1472_v62 = vadd.f32 %v1471_v58, %v1470_v60  ;;  %2977 = vtanh.f32 %v3713_v33 }
 0x21e   : > { %v1394_v23 = vadd.f32 %v1290_v24, %v1280_v0  ;;  %v1291_v28 = vmul.f32 %v1211_v16, %v3643_v30  ;;  %v1220_v5 = vadd.f32 1.0, %v2974_v7  ;;  %v1484_v21 = vadd.f32 %v1483_v18, %v1482_v9 }
 0x21f   : > { %v1408_v55 = vadd.f32 %v1292_v8, %v1282_v51  ;;  %v1293_v14 = vmul.f32 %v1213_v4, %v3661_v20  ;;  %v1473_v52 = vrot.slane %v1472_v62, 1  ;;  %v3735_v35 = vmul.f32 0.5, %v937_v32 }
 0x220   : > { %v2976_v48 = vpop.eup %2975  ;;  %v3732_v17 = vadd.f32 %v1291_v28, %v1281_v27  ;;  %v1300_v22 = vmul.f32 %v1220_v5, %v3666_v49  ;;  %v1485_v60 = vrot.slane %v1484_v21, 1  ;;  %v866_v9 = vadd.f32 %v3592_v41, %v3444_v47 }
 0x221   : > { %v3737_v0 = vadd.f32 %v1293_v14, %v1283_v25  ;;  %v1222_v30 = vadd.f32 1.0, %v2976_v48  ;;  %v3741_v51 = vadd.f32 %v1475_v29, %v1379_v39  ;;  %2979 = vtanh.f32 %v3735_v35  ;;  %v3755_v24 = vpop.f32.mrb[40].mxu1 }
 0x222   : > { %v3743_v20 = vadd.f32 %v1394_v23, %v1300_v22  ;;  %v939_v27 = vadd.f32 %v3594_v2, %v3450_v50  ;;  %v3748_v59 = vadd.f32 %v1487_v13, %v1393_v6  ;;  %v3751_v32 = vmul.f32 0.5, %v866_v9  ;;  %v3765_v6 = vpop.f32.mrb[41].mxu1 }
 0x223   : > { %v1302_v49 = vmul.f32 %v1222_v30, %v3684_v45  ;;  %v868_v58 = vadd.f32 %v3599_v11, %v3453_v53  ;;  %v3757_v41 = vadd.f32 %v1473_v52, %v1472_v62  ;;  %v941_v29 = vadd.f32 %v3601_v54, %v3459_v1  ;;  %v3774_v16 = vpop.f32.mrb[42].mxu1 }
 0x224   : > { %v3759_v39 = vmul.f32 0.5, %v939_v27  ;;  %v872_v2 = vadd.f32 %v3629_v31, %v3444_v47  ;;  %v3767_v45 = vadd.f32 %v1485_v60, %v1484_v21  ;;  %2981 = vtanh.f32 %v3751_v32  ;;  %v3783_v7 = vpop.f32.mrb[43].mxu1 }
 0x225   : > { %v3769_v13 = vadd.f32 %v1408_v55, %v1302_v49  ;;  %v3772_v11 = vmul.f32 0.5, %v868_v58  ;;  %v3777_v48 = vmul.f32 0.5, %v941_v29  ;;  %v945_v31 = vadd.f32 %v3631_v10, %v3450_v50 }
 0x226   : > { %2983 = vtanh.f32 %v3759_v39  ;;  %v3779_v54 = vmul.f32 0.5, %v872_v2  ;;  %v874_v18 = vadd.f32 %v3638_v36, %v3453_v53  ;;  %v947_v25 = vadd.f32 %v3640_v63, %v3459_v1 }
 0x227   : > { %2985 = vtanh.f32 %v3772_v11  ;;  %v876_v8 = vadd.f32 %v3647_v42, %v3444_v47  ;;  %v3793_v4 = vmul.f32 0.5, %v945_v31  ;;  %v949_v10 = vadd.f32 %v3649_v44, %v3450_v50  ;;  %v2978_v23 = vpop.eup %2977 }
 0x228   : > { %2987 = vtanh.f32 %v3777_v48  ;;  %v878_v62 = vadd.f32 %v3655_v43, %v3453_v53  ;;  %v3800_v36 = vmul.f32 0.5, %v874_v18  ;;  %v3802_v28 = vmul.f32 0.5, %v947_v25 }
 0x229   : > { %2989 = vtanh.f32 %v3779_v54  ;;  %v3804_v63 = vmul.f32 0.5, %v876_v8  ;;  %v1221_v42 = vadd.f32 1.0, %v2978_v23  ;;  %v3807_v5 = vmul.f32 0.5, %v949_v10  ;;  %v3818_v14 = vpop.f32.mrb[44].mxu1 }
 0x22a   : > { %2991 = vtanh.f32 %v3793_v4  ;;  %v3809_v21 = vmul.f32 0.5, %v878_v62  ;;  %v951_v44 = vadd.f32 %v3657_v3, %v3459_v1  ;;  %v882_v43 = vadd.f32 %v3679_v37, %v3444_v47  ;;  %v3826_v3 = vpop.f32.mrb[45].mxu1 }
 0x22b   : > { %2993 = vtanh.f32 %v3800_v36  ;;  %v955_v55 = vadd.f32 %v3681_v38, %v3450_v50  ;;  %v2980_v52 = vpop.eup %2979  ;;  %v1301_v22 = vmul.f32 %v1221_v42, %v3713_v33  ;;  %v884_v60 = vadd.f32 %v3686_v40, %v3453_v53  ;;  %v3833_v27 = vpop.f32.mrb[46].mxu1 }
 0x22c   : > { %2995 = vtanh.f32 %v3802_v28  ;;  %v957_v30 = vadd.f32 %v3688_v61, %v3459_v1  ;;  %v1223_v9 = vadd.f32 1.0, %v2980_v52  ;;  %v3829_v37 = vmul.f32 0.5, %v951_v44  ;;  %v3841_v61 = vpop.f32.mrb[47].mxu1 }
 0x22d   : > { %2997 = vtanh.f32 %v3804_v63  ;;  %v3831_v38 = vmul.f32 0.5, %v882_v43  ;;  %v1402_v33 = vadd.f32 %v3732_v17, %v1301_v22  ;;  %v3837_v49 = vmul.f32 0.5, %v955_v55 }
 0x22e   : > { %2999 = vtanh.f32 %v3807_v5  ;;  %v3839_v40 = vmul.f32 0.5, %v884_v60  ;;  %v2982_v58 = vpop.eup %2981  ;;  %v1303_v29 = vmul.f32 %v1223_v9, %v3735_v35  ;;  %v3845_v2 = vmul.f32 0.5, %v957_v30 }
 0x22f   : > { %3001 = vtanh.f32 %v3809_v21  ;;  %v886_v31 = vadd.f32 %v3696_v15, %v3444_v47  ;;  %v1230_v17 = vadd.f32 1.0, %v2982_v58  ;;  %v959_v25 = vadd.f32 %v3698_v57, %v3450_v50 }
 0x230   : > { %v2984_v18 = vpop.eup %2983  ;;  %3003 = vtanh.f32 %v3829_v37  ;;  %v888_v8 = vadd.f32 %v3702_v46, %v3453_v53  ;;  %v1416_v35 = vadd.f32 %v3737_v0, %v1303_v29 }
 0x231   : > { %v2986_v10 = vpop.eup %2985  ;;  %v1232_v62 = vadd.f32 1.0, %v2984_v18  ;;  %3005 = vtanh.f32 %v3831_v38  ;;  %v3856_v23 = vmul.f32 0.5, %v886_v31  ;;  %v1310_v47 = vmul.f32 %v1230_v17, %v3751_v32  ;;  %v3866_v0 = vpop.f32.mrb[48].mxu1 }
 0x232   : > { %v2988_v42 = vpop.eup %2987  ;;  %v1231_v15 = vadd.f32 1.0, %v2986_v10  ;;  %3007 = vtanh.f32 %v3837_v49  ;;  %v3860_v44 = vmul.f32 0.5, %v959_v25  ;;  %v3864_v46 = vmul.f32 0.5, %v888_v8  ;;  %v3871_v22 = vpop.f32.mrb[49].mxu1 }
 0x233   : > { %v2990_v50 = vpop.eup %2989  ;;  %v1312_v57 = vmul.f32 %v1232_v62, %v3759_v39  ;;  %v1233_v53 = vadd.f32 1.0, %v2988_v42  ;;  %3009 = vtanh.f32 %v3839_v40  ;;  %v1396_v55 = vadd.f32 %v3743_v20, %v1310_v47  ;;  %v3876_v58 = vpop.f32.mrb[50].mxu1 }
 0x234   : > { %v2992_v43 = vpop.eup %2991  ;;  %v1311_v32 = vmul.f32 %v1231_v15, %v3772_v11  ;;  %v1240_v52 = vadd.f32 1.0, %v2990_v50  ;;  %3011 = vtanh.f32 %v3845_v2  ;;  %v3880_v18 = vpop.f32.mrb[51].mxu1 }
 0x235   : > { %v2994_v60 = vpop.eup %2993  ;;  %v1410_v39 = vadd.f32 %v3769_v13, %v1312_v57  ;;  %v1313_v30 = vmul.f32 %v1233_v53, %v3777_v48  ;;  %v1242_v9 = vadd.f32 1.0, %v2992_v43  ;;  %3013 = vtanh.f32 %v3856_v23  ;;  %v4191_v57 = vld [vmem:[#allocation4_spill] sm:$0xff] }
 0x236   : > { %v2996_v29 = vpop.eup %2995  ;;  %v1403_v31 = vadd.f32 %v1402_v33, %v1311_v32  ;;  %v1320_v20 = vmul.f32 %v1240_v52, %v3779_v54  ;;  %v1241_v11 = vadd.f32 1.0, %v2994_v60  ;;  %3015 = vtanh.f32 %v3860_v44 }
 0x237   : > { %v2998_v17 = vpop.eup %2997  ;;  %v1417_v25 = vadd.f32 %v1416_v35, %v1313_v30  ;;  %v1322_v13 = vmul.f32 %v1242_v9, %v3793_v4  ;;  %v1243_v8 = vadd.f32 1.0, %v2996_v29  ;;  %3017 = vtanh.f32 %v3864_v46 }
 0x238   : > { %v3000_v48 = vpop.eup %2999  ;;  %v1397_v10 = vadd.f32 %v1396_v55, %v1320_v20  ;;  %v1321_v62 = vmul.f32 %v1241_v11, %v3800_v36  ;;  %v1250_v42 = vadd.f32 1.0, %v2998_v17  ;;  %v961_v54 = vadd.f32 %v3704_v34, %v3459_v1 }
 0x239   : > { %v3002_v33 = vpop.eup %3001  ;;  %v1411_v47 = vadd.f32 %v1410_v39, %v1322_v13  ;;  %v1323_v15 = vmul.f32 %v1243_v8, %v3802_v28  ;;  %v1252_v50 = vadd.f32 1.0, %v3000_v48  ;;  %v998_v35 = vadd.f32 %v3718_v12, %v4191_v57 }
 0x23a   : > { %v3004_v4 = vpop.eup %3003  ;;  %v1404_v53 = vadd.f32 %v1403_v31, %v1321_v62  ;;  %v1330_v43 = vmul.f32 %v1250_v42, %v3804_v63  ;;  %v1251_v32 = vadd.f32 1.0, %v3002_v33  ;;  %v3891_v55 = vmul.f32 0.5, %v961_v54 }
 0x23b   : > { %v3006_v36 = vpop.eup %3005  ;;  %v1418_v52 = vadd.f32 %v1417_v25, %v1323_v15  ;;  %v1332_v60 = vmul.f32 %v1252_v50, %v3807_v5  ;;  %v1253_v1 = vadd.f32 1.0, %v3004_v4  ;;  %v3894_v34 = vmul.f32 0.5, %v998_v35  ;;  %v4192_v25 = vld [vmem:[#allocation5_spill] sm:$0xff] }
 0x23c   : > { %v3008_v39 = vpop.eup %3007  ;;  %v1398_v28 = vadd.f32 %v1397_v10, %v1330_v43  ;;  %v1331_v30 = vmul.f32 %v1251_v32, %v3809_v21  ;;  %v1260_v9 = vadd.f32 1.0, %v3006_v36  ;;  %3019 = vtanh.f32 %v3891_v55 }
 0x23d   : > { %v3010_v12 = vpop.eup %3009  ;;  %v1412_v29 = vadd.f32 %v1411_v47, %v1332_v60  ;;  %v1333_v63 = vmul.f32 %v1253_v1, %v3829_v37  ;;  %v1262_v31 = vadd.f32 1.0, %v3008_v39  ;;  %3021 = vtanh.f32 %v3894_v34 }
 0x23e   : > { %v3012_v20 = vpop.eup %3011  ;;  %v1405_v11 = vadd.f32 %v1404_v53, %v1331_v30  ;;  %v1340_v5 = vmul.f32 %v1260_v9, %v3831_v38  ;;  %v1261_v17 = vadd.f32 1.0, %v3010_v12  ;;  %v1000_v13 = vadd.f32 %v4192_v25, %v3709_v26  ;;  %v2831_v25 = vld [vmem:[%s4183_s5 + $0x100] sm:$0xff]  }
 0x23f   : > { %v3014_v8 = vpop.eup %3013  ;;  %v1419_v21 = vadd.f32 %v1418_v52, %v1333_v63  ;;  %v1342_v48 = vmul.f32 %v1262_v31, %v3837_v49  ;;  %v1263_v10 = vadd.f32 1.0, %v3012_v20  ;;  %v1477_v62 = vrot.slane %v3741_v51, 2 }
 0x240   : > { %v3016_v42 = vpop.eup %3015  ;;  %v1399_v37 = vadd.f32 %v1398_v28, %v1340_v5  ;;  %v1341_v54 = vmul.f32 %v1261_v17, %v3839_v40  ;;  %v1270_v33 = vadd.f32 1.0, %v3014_v8  ;;  %v3906_v47 = vmul.f32 0.5, %v1000_v13 }
 0x241   : > { %v3018_v15 = vpop.eup %3017  ;;  %v1413_v38 = vadd.f32 %v1412_v29, %v1342_v48  ;;  %v1343_v50 = vmul.f32 %v1263_v10, %v3845_v2  ;;  %v1272_v35 = vadd.f32 1.0, %v3016_v42  ;;  %v1478_v4 = vadd.f32 %v1477_v62, %v3741_v51 }
 0x242   : > { %v1529_v53 = vmul.f32 0.015625, %v3757_v41  ;;  %v1406_v49 = vadd.f32 %v1405_v11, %v1341_v54  ;;  %v1350_v43 = vmul.f32 %v1270_v33, %v3856_v23  ;;  %v1271_v32 = vadd.f32 1.0, %v3018_v15 }
 0x243   : > { %v1420_v36 = vadd.f32 %v1419_v21, %v1343_v50  ;;  %v1352_v52 = vmul.f32 %v1272_v35, %v3860_v44  ;;  %v1479_v40 = vrot.slane %v1478_v4, 1  ;;  %v1489_v60 = vrot.slane %v3748_v59, 2  ;;  %v2833_v21 = vld [vmem:[%s4183_s5 + $0x148] sm:$0xff]  }
 0x244   : > { %v1531_v1 = vmul.f32 0.015625, %v3767_v45  ;;  %v1400_v39 = vadd.f32 %v1399_v37, %v1350_v43  ;;  %v1351_v2 = vmul.f32 %v1271_v32, %v3864_v46  ;;  %v1002_v51 = vadd.f32 %v3725_v19, %v4191_v57  ;;  %v2835_v35 = vld [vmem:[%s4183_s5 + $0x108] sm:$0xff]  }
 0x245   : > { %v1414_v28 = vadd.f32 %v1413_v38, %v1352_v52  ;;  %3023 = vtanh.f32 %v3906_v47  ;;  %v1480_v41 = vadd.f32 %v1479_v40, %v1478_v4  ;;  %v1490_v23 = vadd.f32 %v1489_v60, %v3748_v59 }
 0x246   : > { %v3020_v30 = vpop.eup %3019  ;;  %v1493_v9 = vrot.slane %v1400_v39, 4  ;;  %v1407_v44 = vadd.f32 %v1406_v49, %v1351_v2  ;;  %v3920_v12 = vmul.f32 0.5, %v1002_v51  ;;  %v1004_v45 = vadd.f32 %v3728_v56, %v3709_v26  ;;  %v2837_v49 = vld [vmem:[%s4183_s5 + $0x150] sm:$0xff]  }
 0x247   : > { %v3022_v29 = vpop.eup %3021  ;;  %v1273_v63 = vadd.f32 1.0, %v3020_v30  ;;  %v1530_v46 = vmul.f32 0.015625, %v1480_v41  ;;  %v1491_v31 = vrot.slane %v1490_v23, 1  ;;  %v1505_v19 = vrot.slane %v1414_v28, 4  ;;  %v2841_v41 = vld [vmem:[%s4183_s5 + $0x158] sm:$0xff]  }
 0x248   : > { %v3924_v20 = vadd.f32 %v1493_v9, %v1400_v39  ;;  %3025 = vtanh.f32 %v3920_v12  ;;  %v1499_v11 = vrot.slane %v1407_v44, 4  ;;  %v1539_v13 = vpack.c.bf16 %v1529_v53, %v1529_v53 }
 0x249   : > { %v1353_v59 = vmul.f32 %v1273_v63, %v3891_v55  ;;  %v1540_v5 = vpack.c.bf16 %v1530_v46, %v1530_v46  ;;  %v1492_v17 = vadd.f32 %v1491_v31, %v1490_v23  ;;  %v1541_v56 = vpack.c.bf16 %v1531_v1, %v1531_v1 }
 0x24a   : > { %v3931_v8 = vmul.f32 0.5, %v1004_v45  ;;  %v1204_v10 = vadd.f32 1.0, %v3022_v29  ;;  %v1008_v55 = vadd.f32 %v3755_v24, %v4191_v57  ;;  %v3938_v42 = vadd.f32 %v1505_v19, %v1414_v28  ;;  %v2832_v24 = vld [vmem:[%s4183_s5 + $0x180] sm:$0xff]   ;;  %v2838_v28 = vld [vmem:[%s4183_s5 + $0x1d0] sm:$0xff]  }
 0x24b   : > { %v1421_v48 = vadd.f32 %v1420_v36, %v1353_v59  ;;  %2222 = vmatprep.mubr.bf16.mxu0 %v1540_v5  ;;  %v1532_v62 = vmul.f32 0.015625, %v1492_v17  ;;  %v1010_v37 = vadd.f32 %v3765_v6, %v3709_v26  ;;  %v1012_v54 = vadd.f32 %v3774_v16, %v4191_v57  ;;  %v2834_v6 = vld [vmem:[%s4183_s5 + $0x1c8] sm:$0xff]  }
 0x24c   : > { %2223 = vmatmul.mubr.bf16.vlgmr.msra.gmra.mrb[36].mxu0 %v1539_v13  ;;  %3027 = vtanh.f32 %v3931_v8  ;;  %v1495_v33 = vrot.slane %v3924_v20, 2  ;;  %v3946_v15 = vadd.f32 %v1499_v11, %v1407_v44  ;;  %v3957_v16 = vmul.f32 0.5, %v1008_v55 }
 0x24d   : > { %v1511_v38 = vrot.slane %v1421_v48, 4  ;;  %v1542_v50 = vpack.c.bf16 %v1532_v62, %v1532_v62  ;;  %2655 = vmatpush3.bf16.msra.mxu0 %v2831_v25  ;;  %v3959_v4 = vmul.f32 0.5, %v1010_v37  ;;  %v3961_v53 = vmul.f32 0.5, %v1012_v54  ;;  %v2847_v62 = vld [vmem:[%s4183_s5 + $0x120] sm:$0xff]  }
 0x24e   : > { %2656 = vmatprep.subr.bf16.mxu0 %v2833_v21  ;;  %v1014_v43 = vadd.f32 %v3783_v7, %v3709_v26  ;;  %v1284_v52 = vmul.f32 %v1204_v10, %v3894_v34  ;;  %v1018_v40 = vadd.f32 %v3818_v14, %v4191_v57  ;;  %v1020_v60 = vadd.f32 %v3826_v3, %v3709_v26  ;;  %v2836_v14 = vld [vmem:[%s4183_s5 + $0x188] sm:$0xff]   ;;  %v2839_v3 = vld [vmem:[%s4183_s5 + $0x110] sm:$0xff]   ;;  %v2844_v10 = vld [vmem:[%s4183_s5 + $0x198] sm:$0xff]  }
 0x24f   : > { %v3024_v32 = vpop.eup %3023  ;;  %v1512_v36 = vadd.f32 %v1511_v38, %v1421_v48  ;;  %2262 = vmatprep.mubr.bf16.mxu1 %v1542_v50  ;;  %3029 = vtanh.f32 %v3957_v16  ;;  %v1022_v39 = vadd.f32 %v3833_v27, %v4191_v57  ;;  %v1024_v7 = vadd.f32 %v3841_v61, %v3709_v26 }
 0x250   : > { %2263 = vmatmul.mubr.bf16.vlgmr.msra.gmra.mrb[52].mxu1 %v1541_v56  ;;  %v3974_v1 = vmul.f32 0.5, %v1014_v43  ;;  %3031 = vtanh.f32 %v3959_v4  ;;  %v3987_v34 = vmul.f32 0.5, %v1018_v40  ;;  %v3989_v2 = vmul.f32 0.5, %v1020_v60 }
 0x251   : > { %2677 = vmatpush3.bf16.msra.mxu1 %v2832_v24  ;;  %2657 = vmatpush3.bf16.msra.mxu0 %v2835_v35  ;;  %v1028_v27 = vadd.f32 %v3866_v0, %v4191_v57  ;;  %v1205_v51 = vadd.f32 1.0, %v3024_v32  ;;  %3033 = vtanh.f32 %v3961_v53  ;;  %v4000_v23 = vmul.f32 0.5, %v1022_v39 }
 0x252   : > { %v3026_v61 = vpop.eup %3025  ;;  %2678 = vmatprep.subr.bf16.mxu1 %v2834_v6  ;;  %2658 = vmatprep.subr.bf16.mxu0 %v2837_v49  ;;  %v1030_v30 = vadd.f32 %v3871_v22, %v3709_v26  ;;  %3035 = vtanh.f32 %v3974_v1  ;;  %v4005_v9 = vmul.f32 0.5, %v1024_v7  ;;  %v1032_v44 = vadd.f32 %v3876_v58, %v4191_v57  ;;  %v2840_v22 = vld [vmem:[%s4183_s5 + $0x190] sm:$0xff]   ;;  %v2843_v58 = vld [vmem:[%s4183_s5 + $0x118] sm:$0xff]  }
 0x253   : > { %v1214_v0 = vadd.f32 1.0, %v3026_v61  ;;  %3037 = vtanh.f32 %v3987_v34  ;;  %v4010_v45 = vmul.f32 0.5, %v1028_v27  ;;  %v1034_v29 = vadd.f32 %v3880_v18, %v3709_v26  ;;  %v2842_v18 = vld [vmem:[%s4183_s5 + $0x1d8] sm:$0xff]   ;;  %v2853_v27 = vld [vmem:[%s4183_s5 + $0x170] sm:$0xff]  }
 0x254   : > { %v1501_v63 = vrot.slane %v3946_v15, 2  ;;  %3039 = vtanh.f32 %v3989_v2  ;;  %v4023_v57 = vmul.f32 0.5, %v1030_v30  ;;  %v1513_v31 = vrot.slane %v1512_v36, 2 }
 0x255   : > { %v1294_v46 = vmul.f32 %v1214_v0, %v3920_v12  ;;  %2679 = vmatpush3.bf16.msra.mxu1 %v2836_v14  ;;  %2659 = vmatpush3.bf16.msra.mxu0 %v2839_v3  ;;  %3041 = vtanh.f32 %v4000_v23  ;;  %v2845_v12 = vld [vmem:[%s4183_s5 + $0x160] sm:$0xff]   ;;  %v4032_v19 = vmul.f32 0.5, %v1032_v44  ;;  %v4034_v11 = vmul.f32 0.5, %v1034_v29  ;;  %v2850_v3 = vld [vmem:[%s4183_s5 + $0x1e8] sm:$0xff]  }
 0x256   : > { %v3028_v26 = vpop.eup %3027  ;;  %2680 = vmatprep.subr.bf16.mxu1 %v2838_v28  ;;  %2660 = vmatprep.subr.bf16.mxu0 %v2841_v41  ;;  %v1502_v59 = vadd.f32 %v1501_v63, %v3946_v15  ;;  %3043 = vtanh.f32 %v4005_v9  ;;  %v1514_v25 = vadd.f32 %v1513_v31, %v1512_v36  ;;  %v4041_v13 = vadd.f32 %v1495_v33, %v3924_v20  ;;  %v2848_v36 = vld [vmem:[%s4183_s5 + $0x1a0] sm:$0xff]   ;;  %v2852_v31 = vld [vmem:[%s4183_s5 + $0x1a8] sm:$0xff]  }
 0x257   : > { %v1422_v5 = vadd.f32 %v1294_v46, %v1284_v52  ;;  %v1215_v17 = vadd.f32 1.0, %v3028_v26  ;;  %3045 = vtanh.f32 %v4010_v45  ;;  %v1285_v21 = vmul.f32 %v1205_v51, %v3906_v47  ;;  %v2846_v47 = vld [vmem:[%s4183_s5 + $0x1e0] sm:$0xff]   ;;  %v2851_v52 = vld [vmem:[%s4183_s5 + $0x128] sm:$0xff]  }
 0x258   : > { %v1503_v56 = vrot.slane %v1502_v59, 1  ;;  %3047 = vtanh.f32 %v4023_v57  ;;  %v1515_v20 = vrot.slane %v1514_v25, 1  ;;  %v1507_v37 = vrot.slane %v3938_v42, 2 }
 0x259   : > { %v1295_v48 = vmul.f32 %v1215_v17, %v3931_v8  ;;  %2681 = vmatpush3.bf16.msra.mxu1 %v2840_v22  ;;  %2661 = vmatpush3.bf16.msra.mxu0 %v2843_v58  ;;  %v3030_v55 = vpop.eup %3029  ;;  %v2849_v8 = vld [vmem:[%s4183_s5 + $0x168] sm:$0xff]   ;;  %3049 = vtanh.f32 %v4032_v19  ;;  %v1497_v60 = vrot.slane %v4041_v13, 1 }
 0x25a   : > { %2682 = vmatprep.subr.bf16.mxu1 %v2842_v18  ;;  %2662 = vmatprep.subr.bf16.mxu0 %v2845_v12  ;;  %v1504_v54 = vadd.f32 %v1503_v56, %v1502_v59  ;;  %v3032_v33 = vpop.eup %3031  ;;  %v1224_v38 = vadd.f32 1.0, %v3030_v55  ;;  %3051 = vtanh.f32 %v4034_v11  ;;  %v1516_v50 = vadd.f32 %v1515_v20, %v1514_v25 }
 0x25b   : > { %v1429_v15 = vadd.f32 %v1295_v48, %v1285_v21  ;;  %v3034_v24 = vpop.eup %3033  ;;  %v1225_v35 = vadd.f32 1.0, %v3032_v33  ;;  %v1508_v7 = vadd.f32 %v1507_v37, %v3938_v42  ;;  %v1498_v26 = vadd.f32 %v1497_v60, %v4041_v13  ;;  %v2864_v60 = vld [vmem:[%s4183_s5 + $0x208] sm:$0xff]  }
 0x25c   : > { %v1534_v6 = vmul.f32 0.015625, %v1504_v54  ;;  %v3036_v49 = vpop.eup %3035  ;;  %v1304_v43 = vmul.f32 %v1224_v38, %v3957_v16  ;;  %v1234_v32 = vadd.f32 1.0, %v3034_v24  ;;  %v1536_v40 = vmul.f32 0.015625, %v1516_v50  ;;  %v2861_v50 = vld [vmem:[%s4183_s5 + $0x240] sm:$0xff]  }
 0x25d   : > { %2683 = vmatpush3.bf16.msra.mxu1 %v2844_v10  ;;  %2663 = vmatpush3.bf16.msra.mxu0 %v2847_v62  ;;  %v3038_v39 = vpop.eup %3037  ;;  %v1305_v14 = vmul.f32 %v1225_v35, %v3959_v4  ;;  %v1235_v16 = vadd.f32 1.0, %v3036_v49  ;;  %v1509_v17 = vrot.slane %v1508_v7, 1  ;;  %v1533_v54 = vmul.f32 0.015625, %v1498_v26  ;;  %v2874_v26 = vld [vmem:[%s4183_s5 + $0x230] sm:$0xff]  }
 0x25e   : > { %2684 = vmatprep.subr.bf16.mxu1 %v2846_v47  ;;  %2664 = vmatprep.subr.bf16.mxu0 %v2849_v8  ;;  %v1544_v61 = vpack.c.bf16 %v1534_v6, %v1534_v6  ;;  %v3040_v51 = vpop.eup %3039  ;;  %v1423_v28 = vadd.f32 %v1422_v5, %v1304_v43  ;;  %v1314_v41 = vmul.f32 %v1234_v32, %v3961_v53  ;;  %v1244_v30 = vadd.f32 1.0, %v3038_v39  ;;  %v2855_v53 = vld [vmem:[%s4183_s5 + $0x130] sm:$0xff]   ;;  %v2857_v5 = vld [vmem:[%s4183_s5 + $0x178] sm:$0xff]   ;;  %v2862_v32 = vld [vmem:[%s4183_s5 + $0x200] sm:$0xff]  }
 0x25f   : > { %v1546_v42 = vpack.c.bf16 %v1536_v40, %v1536_v40  ;;  %v3042_v0 = vpop.eup %3041  ;;  %v1430_v4 = vadd.f32 %v1429_v15, %v1305_v14  ;;  %v1315_v44 = vmul.f32 %v1235_v16, %v3974_v1  ;;  %v1245_v29 = vadd.f32 1.0, %v3040_v51  ;;  %v2856_v8 = vld [vmem:[%s4183_s5 + $0x1b0] sm:$0xff]   ;;  %v2867_v51 = vld [vmem:[%s4183_s5 + $0x258] sm:$0xff]  }
 0x260   : > { %2302 = vmatprep.mubr.bf16.mxu0 %v1544_v61  ;;  %v3044_v63 = vpop.eup %3043  ;;  %v1424_v46 = vadd.f32 %v1423_v28, %v1314_v41  ;;  %v1324_v22 = vmul.f32 %v1244_v30, %v3987_v34  ;;  %v1254_v58 = vadd.f32 1.0, %v3042_v0  ;;  %v2854_v34 = vld [vmem:[%s4183_s5 + $0x1f0] sm:$0xff]   ;;  %v1510_v38 = vadd.f32 %v1509_v17, %v1508_v7  ;;  %v2868_v30 = vld [vmem:[%s4183_s5 + $0x218] sm:$0xff]   ;;  %v2869_v0 = vld [vmem:[%s4183_s5 + $0x260] sm:$0xff]  }
 0x261   : > { %2685 = vmatpush3.bf16.msra.mxu1 %v2848_v36  ;;  %2665 = vmatpush3.bf16.msra.mxu0 %v2851_v52  ;;  %v3046_v1 = vpop.eup %3045  ;;  %v1431_v18 = vadd.f32 %v1430_v4, %v1315_v44  ;;  %v1325_v12 = vmul.f32 %v1245_v29, %v3989_v2  ;;  %v1255_v59 = vadd.f32 1.0, %v3044_v63  ;;  %v1543_v52 = vpack.c.bf16 %v1533_v54, %v1533_v54  ;;  %v2865_v16 = vld [vmem:[%s4183_s5 + $0x250] sm:$0xff]   ;;  %v2870_v29 = vld [vmem:[%s4183_s5 + $0x220] sm:$0xff]  }
 0x262   : > { %2686 = vmatprep.subr.bf16.mxu1 %v2850_v3  ;;  %2666 = vmatprep.subr.bf16.mxu0 %v2853_v27  ;;  %v3048_v25 = vpop.eup %3047  ;;  %v1425_v56 = vadd.f32 %v1424_v46, %v1324_v22  ;;  %v1334_v13 = vmul.f32 %v1254_v58, %v4000_v23  ;;  %v1264_v21 = vadd.f32 1.0, %v3046_v1  ;;  %v2859_v23 = vld [vmem:[%s4183_s5 + $0x138] sm:$0xff]   ;;  %v1535_v40 = vmul.f32 0.015625, %v1510_v38  ;;  %v2866_v27 = vld [vmem:[%s4183_s5 + $0x210] sm:$0xff]   ;;  %v2871_v46 = vld [vmem:[%s4183_s5 + $0x268] sm:$0xff]  }
 0x263   : > { %2342 = vmatprep.mubr.bf16.mxu1 %v1546_v42  ;;  %v3050_v48 = vpop.eup %3049  ;;  %v1432_v2 = vadd.f32 %v1431_v18, %v1325_v12  ;;  %v1335_v10 = vmul.f32 %v1255_v59, %v4005_v9  ;;  %v1265_v62 = vadd.f32 1.0, %v3048_v25  ;;  %v2872_v58 = vld [vmem:[%s4183_s5 + $0x228] sm:$0xff]   ;;  %v2875_v1 = vld [vmem:[%s4183_s5 + $0x278] sm:$0xff]   ;;  %v1709_v17 = vld [vmem:[%s4184_s6] sm:$0x1] }
 0x264   : > { %v3052_v20 = vpop.eup %3051  ;;  %v1426_v55 = vadd.f32 %v1425_v56, %v1334_v13  ;;  %v1344_v37 = vmul.f32 %v1264_v21, %v4010_v45  ;;  %v1274_v47 = vadd.f32 1.0, %v3050_v48  ;;  %v2858_v45 = vld [vmem:[%s4183_s5 + $0x1f8] sm:$0xff]   ;;  %v1545_v14 = vpack.c.bf16 %v1535_v40, %v1535_v40 }
 0x265   : > { %2687 = vmatpush3.bf16.msra.mxu1 %v2852_v31  ;;  %2667 = vmatpush3.bf16.msra.mxu0 %v2855_v53  ;;  %v1433_v33 = vadd.f32 %v1432_v2, %v1335_v10  ;;  %v1345_v9 = vmul.f32 %v1265_v62, %v4023_v57  ;;  %v1275_v15 = vadd.f32 1.0, %v3052_v20  ;;  %v2860_v57 = vld [vmem:[%s4183_s5 + $0x1b8] sm:$0xff]   ;;  %v2873_v31 = vld [vmem:[%s4183_s5 + $0x270] sm:$0xff]  }
 0x266   : > { %2688 = vmatprep.subr.bf16.mxu1 %v2854_v34  ;;  %2668 = vmatprep.subr.bf16.mxu0 %v2857_v5  ;;  %v1427_v24 = vadd.f32 %v1426_v55, %v1344_v37  ;;  %v1354_v35 = vmul.f32 %v1274_v47, %v4032_v19  ;;  %v2863_v19 = vld [vmem:[%s4183_s5 + $0x248] sm:$0xff]   ;;  %v2876_v12 = vld [vmem:[%s4183_s5 + $0x238] sm:$0xff]  }
 0x267   : > { %v1434_v6 = vadd.f32 %v1433_v33, %v1345_v9  ;;  %v1355_v49 = vmul.f32 %v1275_v15, %v4034_v11 }
 0x268   : > { %v1428_v43 = vadd.f32 %v1427_v24, %v1354_v35 }
 0x269   : > { %2689 = vmatpush3.bf16.msra.mxu1 %v2856_v8  ;;  %2669 = vmatpush3.bf16.msra.mxu0 %v2859_v23  ;;  %v1435_v36 = vadd.f32 %v1434_v6, %v1355_v49 }
 0x26a   : > { %2690 = vmatprep.subr.bf16.mxu1 %v2858_v45  ;;  %2698 = vmatprep.subr.bf16.mxu0 %v2861_v50  ;;  %v1517_v39 = vrot.slane %v1428_v43, 4 }
 0x26b   : > { %v1523_v11 = vrot.slane %v1435_v36, 4 }
 0x26c   : > { %2303 = vmatmul.mubr.bf16.vlgmr.msra.gmra.mrb[40].mxu0 %v1543_v52  ;;  %v1518_v61 = vadd.f32 %v1517_v39, %v1428_v43  ;;  %v4193_v52 = vld [vmem:[#allocation3_spill] sm:$0xff] }
 0x26d   : > { %2691 = vmatpush3.bf16.msra.mxu1 %v2860_v57  ;;  %2699 = vmatpush3.bf16.msra.mxu0 %v2862_v32  ;;  %v1524_v7 = vadd.f32 %v1523_v11, %v1435_v36 }
 0x26e   : > { %2700 = vmatprep.subr.bf16.mxu0 %v2863_v19  ;;  %v1519_v42 = vrot.slane %v1518_v61, 2 }
 0x26f   : > { %v1525_v3 = vrot.slane %v1524_v7, 2 }
 0x270   : > { %2343 = vmatmul.mubr.bf16.vlgmr.msra.gmra.mrb[56].mxu1 %v1545_v14  ;;  %v1520_v63 = vadd.f32 %v1519_v42, %v1518_v61 }
 0x271   : > { %2701 = vmatpush3.bf16.msra.mxu0 %v2864_v60  ;;  %v1526_v28 = vadd.f32 %v1525_v3, %v1524_v7 }
 0x272   : > { %2702 = vmatprep.subr.bf16.mxu0 %v2865_v16  ;;  %v1521_v53 = vrot.slane %v1520_v63, 1 }
 0x273   : > { %v1527_v41 = vrot.slane %v1526_v28, 1 }
 0x274   : > { %v1522_v18 = vadd.f32 %v1521_v53, %v1520_v63 }
 0x275   : > { %2703 = vmatpush3.bf16.msra.mxu0 %v2866_v27  ;;  %v1528_v4 = vadd.f32 %v1527_v41, %v1526_v28 }
 0x276   : > { %2704 = vmatprep.subr.bf16.mxu0 %v2867_v51  ;;  %v1537_v59 = vmul.f32 0.015625, %v1522_v18 }
 0x277   : > { %v1538_v44 = vmul.f32 0.015625, %v1528_v4 }
 0x278   : > { %v1547_v34 = vpack.c.bf16 %v1537_v59, %v1537_v59 }
 0x279   : > { %2705 = vmatpush3.bf16.msra.mxu0 %v2868_v30  ;;  %v1548_v22 = vpack.c.bf16 %v1538_v44, %v1538_v44 }
 0x27a   : > { %2706 = vmatprep.subr.bf16.mxu0 %v2869_v0 }
 0x27b   : > { %2382 = vmatprep.mubr.bf16.mxu0 %v1548_v22 }
 0x27d   : > { %2707 = vmatpush3.bf16.msra.mxu0 %v2870_v29 }
 0x27e   : > { %2708 = vmatprep.subr.bf16.mxu0 %v2871_v46 }
 0x281   : > { %2709 = vmatpush3.bf16.msra.mxu0 %v2872_v58 }
 0x282   : > { %2710 = vmatprep.subr.bf16.mxu0 %v2873_v31 }
 0x285   : > { %2711 = vmatpush3.bf16.msra.mxu0 %v2874_v26 }
 0x286   : > { %2712 = vmatprep.subr.bf16.mxu0 %v2875_v1 }
 0x289   : > { %2713 = vmatpush3.bf16.msra.mxu0 %v2876_v12 }
 0x28c   : > { %2383 = vmatmul.mubr.bf16.vlgmr.msra.gmra.mrb[44].mxu0 %v1547_v34 }
 0x31f   : > { %v2626_v5 = vpop.f32.mrb[36].mxu0 }
 0x320   : > { %v2627_v25 = vpop.f32.mrb[37].mxu0 }
 0x321   : > { %v2628_v56 = vadd.f32 %v2627_v25, %v2626_v5  ;;  %v2629_v13 = vpop.f32.mrb[38].mxu0 }
 0x322   : > { %v2630_v21 = vpop.f32.mrb[39].mxu0 }
 0x323   : > { %v2648_v48 = vpop.f32.mrb[52].mxu1  ;;  %v2225_v2 = vadd.f32 %v2628_v56, %v1709_v17 }
 0x324   : > { %v2649_v10 = vpop.f32.mrb[53].mxu1 }
 0x325   : > { %v2650_v62 = vadd.f32 %v2649_v10, %v2648_v48  ;;  %v2651_v20 = vpop.f32.mrb[54].mxu1 }
 0x326   : > { %v2652_v55 = vpop.f32.mrb[55].mxu1 }
 0x327   : > { %v2265_v37 = vadd.f32 %v2650_v62, %v2225_v2 }
 0x33f   : > { %v2670_v47 = vpop.f32.mrb[40].mxu0 }
 0x340   : > { %v2671_v8 = vpop.f32.mrb[41].mxu0 }
 0x341   : > { %v2672_v23 = vadd.f32 %v2671_v8, %v2670_v47  ;;  %v2673_v54 = vpop.f32.mrb[42].mxu0 }
 0x342   : > { %v2674_v33 = vpop.f32.mrb[43].mxu0 }
 0x343   : > { %v2692_v9 = vpop.f32.mrb[56].mxu1  ;;  %v2305_v15 = vadd.f32 %v2672_v23, %v2265_v37 }
 0x344   : > { %v2693_v45 = vpop.f32.mrb[57].mxu1 }
 0x345   : > { %v2694_v38 = vadd.f32 %v2693_v45, %v2692_v9  ;;  %v2695_v50 = vpop.f32.mrb[58].mxu1 }
 0x346   : > { %v2696_v24 = vpop.f32.mrb[59].mxu1 }
 0x347   : > { %v2345_v35 = vadd.f32 %v2694_v38, %v2305_v15 }
 0x35f   : > { %v2714_v6 = vpop.f32.mrb[44].mxu0 }
 0x360   : > { %v2715_v49 = vpop.f32.mrb[45].mxu0 }
 0x361   : > { %v2716_v43 = vadd.f32 %v2715_v49, %v2714_v6  ;;  %v2717_v57 = vpop.f32.mrb[46].mxu0 }
 0x362   : > { %v2718_v32 = vpop.f32.mrb[47].mxu0 }
 0x363   : > { %v2385_v36 = vadd.f32 %v2716_v43, %v2345_v35 }
 0x365   : > { %v2393_v40 = vrot.slane %v2385_v36, %v4193_v52 }
 0x367   : > { %2394 = vst [vmem:[%s304_s15] sm:$0xff] %v2393_v40 }
 0x368 PF: > { %s17_s26 = sadd.s32 1, %s3075_s26   ;;  %s4194_s24 = smov %s3071_s25 }
 0x369   : > { %p14_p5 = scmp.ge.s32.totalorder %s17_s26, 4   ;;  %s4195_s25 = smov %s4197_s27 }
 0x36b   :  { %16 = sbr.rel (!%p14_p5) target bundleno = 2 (0x2), region = 86 }

</bundles_post_ra>
